<compile_context>
chip_gen: v6e
topology: v6e:2x2x1
jax: 0.10.0
libtpu: 0.0.40
codegen_flags: <defaults>
</compile_context>

<pallas_src>
import math

import jax
import jax.numpy as jnp
from jax import lax
from jax.experimental import pallas as pl
from jax.experimental.pallas import tpu as pltpu

# ------------------------- small demo configuration --------------------------
B        = 2          # batch
HIST_LEN = 8          # L (seq_len / hist_len)
PRED_LEN = 4          # P
N_VARS   = 4          # N (number of variates)
N_MARK   = 3          # M (number of time-mark features)
N_TOK    = N_VARS + N_MARK          # 7 real tokens per batch element
TOK_PAD  = 8                        # padded to a full sublane tile
D_MODEL  = 32
N_HEADS  = 2
D_HEAD   = D_MODEL // N_HEADS
D_FF     = 64
E_LAYERS = 2
EPS_REVIN = 1e-5      # torch: var + 1e-05
EPS_LN    = 1e-5      # nn.LayerNorm default eps
P_PAD     = 128       # lane-dense padded projection width (>= PRED_LEN)


# --------------------------------- kernel ------------------------------------
def itransformer_kernel(
    tok_ref,                       # (TOK_PAD, L)      f32   one batch element's tokens
    w_emb_ref, b_emb_ref,          # (L, D) bf16, (1, D) f32
    m_ref, r_ref,                  # (E*H, D, D) bf16, (E*H, 1, D) f32   merged Q/K side
    wvo_ref, b_attn_ref,           # (E*H, D, D) bf16, (E, 1, D) f32     merged V/O side
    w1_ref, b1_ref,                # (E, D, F) bf16, (E, 1, F) f32
    w2_ref, b2_ref,                # (E, F, D) bf16, (E, 1, D) f32
    ln_ref,                        # (4E+2, D) f32: per layer [g1, b1, g2, b2], then [gn, bn]
    wp_ref, bp_ref,                # (D, P_PAD) bf16, (1, P_PAD) f32
    out_ref,                       # (TOK_PAD, P_PAD) f32
):
    f32, bf16 = jnp.float32, jnp.bfloat16

    def bdot(a, w):                # bf16 x bf16 MXU matmul, f32 accumulation
        return jnp.dot(a.astype(bf16), w, preferred_element_type=f32)

    def layer_norm(z, row):
        g = ln_ref[row:row + 1]
        b = ln_ref[row + 1:row + 2]
        mu = jnp.mean(z, axis=-1, keepdims=True)
        zc = z - mu
        var = jnp.mean(zc * zc, axis=-1, keepdims=True)
        return zc * lax.rsqrt(var + EPS_LN) * g + b

    tokens = tok_ref[...]                                           # (T, L)

    # --- masks generated in-kernel (no DMA'd bias arrays) ---------------------
    row_id = lax.broadcasted_iota(jnp.int32, (TOK_PAD, 1), 0)
    var_mask = (row_id < N_VARS).astype(f32)                        # 1 for variate rows
    col_id = lax.broadcasted_iota(jnp.int32, (1, TOK_PAD), 1)
    key_bias = jnp.where(col_id < N_TOK, 0.0, -1e30).astype(f32)    # mask padded key col

    # --- RevIN: per-variate normalization over time (mean / biased var) -------
    row_mean = jnp.mean(tokens, axis=1, keepdims=True)
    cen = tokens - row_mean
    row_var = jnp.mean(cen * cen, axis=1, keepdims=True)            # unbiased=False
    row_std = jnp.sqrt(row_var + EPS_REVIN)
    mean_eff = var_mask * row_mean                                  # mark/pad rows: untouched
    std_eff = var_mask * row_std + (1.0 - var_mask)
    tok_n = (tokens - mean_eff) / std_eff

    # --- inverted embedding: Linear(L -> D) per token --------------------------
    enc = bdot(tok_n, w_emb_ref[...]) + b_emb_ref[...]              # (T, D)

    for l in range(E_LAYERS):                       # static unrolled encoder layers
        enc_b = enc.astype(bf16)

        # query-side merged projection, heads stacked along sublanes:
        #   t_h = enc @ (scale * Wq_h Wk_h^T) + scale * bq_h Wk_h^T
        t_heads = [
            jnp.dot(enc_b, m_ref[l * N_HEADS + h], preferred_element_type=f32)
            + r_ref[l * N_HEADS + h]
            for h in range(N_HEADS)
        ]
        t_packed = jnp.concatenate(t_heads, axis=0)                 # (H*T, D)

        # ONE score matmul for all heads; keys/values are enc itself
        s = lax.dot_general(t_packed.astype(bf16), enc_b,
                            (((1,), (1,)), ((), ())),
                            preferred_element_type=f32) + key_bias  # (H*T, T)
        s = s - jnp.max(s, axis=-1, keepdims=True)
        probs = jnp.exp(s)
        probs = probs * pl.reciprocal(jnp.sum(probs, axis=-1, keepdims=True),
                                      approx=True)

        # ONE PV matmul for all heads
        u = jnp.dot(probs.astype(bf16), enc_b,
                    preferred_element_type=f32)                     # (H*T, D)

        # head merge folded into Wo: static 8-aligned sublane slices, no lane concat
        attn = b_attn_ref[l]                                        # (1, D) folded biases
        for h in range(N_HEADS):
            attn = attn + bdot(u[h * TOK_PAD:(h + 1) * TOK_PAD],
                               wvo_ref[l * N_HEADS + h])            # (T, D)

        x1 = layer_norm(enc + attn, 4 * l)
        # FFN: conv1d(kernel_size=1) == Linear; activation == relu; dropout == identity
        y = bdot(x1, w1_ref[l]) + b1_ref[l]
        y = jnp.maximum(y, 0.0)
        y = bdot(y, w2_ref[l]) + b2_ref[l]
        enc = layer_norm(x1 + y, 4 * l + 2)

    enc = layer_norm(enc, 4 * E_LAYERS)                             # encoder final norm

    # --- projection to (padded) pred_len and de-normalization ------------------
    proj = bdot(enc, wp_ref[...]) + bp_ref[...]                     # (T, P_PAD), lane-dense
    out_ref[...] = proj * std_eff + mean_eff


# ------------------------------- wrapper --------------------------------------
@jax.jit
def itransformer_forward(x, mark, packed):
    # glue: build inverted tokens (B, N_TOK, L), pad token rows to a full sublane tile
    tokens = jnp.concatenate(
        [jnp.swapaxes(x, 1, 2), jnp.swapaxes(mark, 1, 2)], axis=1
    ).astype(jnp.float32)                                            # (B, N_TOK, L)
    tokens = jnp.pad(tokens, ((0, 0), (0, TOK_PAD - N_TOK), (0, 0)))
    tok_flat = tokens.reshape(B * TOK_PAD, HIST_LEN)

    args = [
        tok_flat,
        packed["w_emb"], packed["b_emb"],
        packed["m"], packed["r"],
        packed["wvo"], packed["b_attn"],
        packed["w1"], packed["b1"],
        packed["w2"], packed["b2"],
        packed["ln"], packed["wp"], packed["bp"],
    ]

    def resident(a):               # whole-array, VMEM-resident across grid steps
        nd = a.ndim
        return pl.BlockSpec(a.shape, lambda b, nd=nd: (0,) * nd)

    in_specs = [pl.BlockSpec((TOK_PAD, HIST_LEN), lambda b: (b, 0))] + \
               [resident(a) for a in args[1:]]
    out_specs = pl.BlockSpec((TOK_PAD, P_PAD), lambda b: (b, 0))

    out = pl.pallas_call(
        itransformer_kernel,
        out_shape=jax.ShapeDtypeStruct((B * TOK_PAD, P_PAD), jnp.float32),
        grid=(B,),
        in_specs=in_specs,
        out_specs=out_specs,
        compiler_params=pltpu.CompilerParams(
            dimension_semantics=("parallel",),          # megacore sharding on v7x
            vmem_limit_bytes=32 * 1024 * 1024,
        ),
    )(*args)

    # glue: projection(enc_out).permute(0, 2, 1)[:, :, :N]  (drop row/lane padding)
    out = out.reshape(B, TOK_PAD, P_PAD)[:, :N_VARS, :PRED_LEN]      # (B, N, P)
    return jnp.swapaxes(out, 1, 2)                                   # (B, P, N)


# ------------------- one-time parameter packing / merging ---------------------
def pack_params(p):
    """Hoisted out of the per-call path: merge per-head weights, fold biases, cast."""
    bf16 = jnp.bfloat16
    scale = 1.0 / math.sqrt(D_HEAD)

    wq = p["wq"].reshape(E_LAYERS, D_MODEL, N_HEADS, D_HEAD)         # (E, D, H, DH)
    wk = p["wk"].reshape(E_LAYERS, D_MODEL, N_HEADS, D_HEAD)
    wv = p["wv"].reshape(E_LAYERS, D_MODEL, N_HEADS, D_HEAD)
    wo = p["wo"].reshape(E_LAYERS, N_HEADS, D_HEAD, D_MODEL)         # (E, H, DH, D)
    bq = p["bq"].reshape(E_LAYERS, N_HEADS, D_HEAD)
    bv = p["bv"].reshape(E_LAYERS, N_HEADS, D_HEAD)

    # merged score weights (scale folded in) and merged value/output weights
    m = scale * jnp.einsum("lahe,lbhe->lhab", wq, wk)                # (E, H, D, D)
    r = scale * jnp.einsum("lhe,lbhe->lhb", bq, wk)                  # (E, H, D)
    wvo = jnp.einsum("lahe,lheb->lhab", wv, wo)                      # (E, H, D, D)
    # bk drops out of softmax (row-shift invariance); bv folds because softmax rows sum to 1
    b_attn = jnp.einsum("lhe,lheb->lb", bv, wo) + p["bo"]            # (E, D)

    ln_rows = []
    for l in range(E_LAYERS):
        ln_rows.extend([p["g1"][l], p["be1"][l], p["g2"][l], p["be2"][l]])
    ln_rows.extend([p["gn"], p["bn"]])
    ln_pack = jnp.stack(ln_rows, axis=0)                             # (4E+2, D)

    wp_pad = jnp.zeros((D_MODEL, P_PAD), jnp.float32).at[:, :PRED_LEN].set(p["wp"])
    bp_pad = jnp.zeros((1, P_PAD), jnp.float32).at[:, :PRED_LEN].set(p["bp"][None, :])

    return {
        "w_emb": p["w_emb"].astype(bf16),
        "b_emb": p["b_emb"][None, :],
        "m": m.reshape(E_LAYERS * N_HEADS, D_MODEL, D_MODEL).astype(bf16),
        "r": r.reshape(E_LAYERS * N_HEADS, 1, D_MODEL),
        "wvo": wvo.reshape(E_LAYERS * N_HEADS, D_MODEL, D_MODEL).astype(bf16),
        "b_attn": b_attn[:, None, :],
        "w1": p["w1"].astype(bf16), "b1": p["b1"][:, None, :],
        "w2": p["w2"].astype(bf16), "b2": p["b2"][:, None, :],
        "ln": ln_pack,
        "wp": wp_pad.astype(bf16), "bp": bp_pad,
    }


# ----------------------- deterministic parameter init -------------------------
def init_params(key):
    ks = jax.random.split(key, 16)

    def w(k, shape, fan_in):
        return jax.random.normal(k, shape, jnp.float32) / math.sqrt(fan_in)

    def b(k, shape):
        return 0.01 * jax.random.normal(k, shape, jnp.float32)

    p = {}
    p["w_emb"] = w(ks[0], (HIST_LEN, D_MODEL), HIST_LEN)
    p["b_emb"] = b(ks[1], (D_MODEL,))
    p["wq"] = w(ks[2], (E_LAYERS, D_MODEL, D_MODEL), D_MODEL)
    p["bq"] = b(ks[3], (E_LAYERS, D_MODEL))
    p["wk"] = w(ks[4], (E_LAYERS, D_MODEL, D_MODEL), D_MODEL)
    p["bk"] = b(ks[5], (E_LAYERS, D_MODEL))
    p["wv"] = w(ks[6], (E_LAYERS, D_MODEL, D_MODEL), D_MODEL)
    p["bv"] = b(ks[7], (E_LAYERS, D_MODEL))
    p["wo"] = w(ks[8], (E_LAYERS, D_MODEL, D_MODEL), D_MODEL)
    p["bo"] = b(ks[9], (E_LAYERS, D_MODEL))
    p["g1"] = jnp.ones((E_LAYERS, D_MODEL), jnp.float32)
    p["be1"] = jnp.zeros((E_LAYERS, D_MODEL), jnp.float32)
    p["w1"] = w(ks[10], (E_LAYERS, D_MODEL, D_FF), D_MODEL)
    p["b1"] = b(ks[11], (E_LAYERS, D_FF))
    p["w2"] = w(ks[12], (E_LAYERS, D_FF, D_MODEL), D_FF)
    p["b2"] = b(ks[13], (E_LAYERS, D_MODEL))
    p["g2"] = jnp.ones((E_LAYERS, D_MODEL), jnp.float32)
    p["be2"] = jnp.zeros((E_LAYERS, D_MODEL), jnp.float32)
    p["gn"] = jnp.ones((D_MODEL,), jnp.float32)
    p["bn"] = jnp.zeros((D_MODEL,), jnp.float32)
    p["wp"] = w(ks[14], (D_MODEL, PRED_LEN), D_MODEL)
    p["bp"] = b(ks[15], (PRED_LEN,))
    return p


# ----------------- pure-JAX f32 reference (PyTorch order / spec) ---------------
@jax.jit
def reference_forward(x, mark, p):
    means = jnp.mean(x, axis=1, keepdims=True)
    xc = x - means
    var = jnp.mean(xc * xc, axis=1, keepdims=True)
    stdev = jnp.sqrt(var + EPS_REVIN)
    xn = xc / stdev

    tokens = jnp.concatenate([jnp.swapaxes(xn, 1, 2), jnp.swapaxes(mark, 1, 2)], axis=1)
    enc = jnp.einsum("btl,ld->btd", tokens, p["w_emb"]) + p["b_emb"]

    def ln(z, g, b_):
        mu = jnp.mean(z, -1, keepdims=True)
        zc = z - mu
        v_ = jnp.mean(zc * zc, -1, keepdims=True)
        return zc / jnp.sqrt(v_ + EPS_LN) * g + b_

    scale = 1.0 / math.sqrt(D_HEAD)
    for l in range(E_LAYERS):
        q = jnp.einsum("btd,de->bte", enc, p["wq"][l]) + p["bq"][l]
        k = jnp.einsum("btd,de->bte", enc, p["wk"][l]) + p["bk"][l]
        v = jnp.einsum("btd,de->bte", enc, p["wv"][l]) + p["bv"][l]
        qh = q.reshape(B, N_TOK, N_HEADS, D_HEAD)
        kh = k.reshape(B, N_TOK, N_HEADS, D_HEAD)
        vh = v.reshape(B, N_TOK, N_HEADS, D_HEAD)
        s = jnp.einsum("bthd,bshd->bhts", qh, kh) * scale
        a = jax.nn.softmax(s, axis=-1)
        o = jnp.einsum("bhts,bshd->bthd", a, vh).reshape(B, N_TOK, D_MODEL)
        attn = jnp.einsum("btd,de->bte", o, p["wo"][l]) + p["bo"][l]
        x1 = ln(enc + attn, p["g1"][l], p["be1"][l])
        y = jnp.maximum(jnp.einsum("btd,df->btf", x1, p["w1"][l]) + p["b1"][l], 0.0)
        y = jnp.einsum("btf,fd->btd", y, p["w2"][l]) + p["b2"][l]
        enc = ln(x1 + y, p["g2"][l], p["be2"][l])

    enc = ln(enc, p["gn"], p["bn"])
    proj = jnp.einsum("btd,dp->btp", enc, p["wp"]) + p["bp"]          # (B, T, P)
    dec = jnp.swapaxes(proj, 1, 2)[:, :, :N_VARS]                     # (B, P, N)
    dec = dec * stdev[:, 0:1, :] + means[:, 0:1, :]
    return dec[:, -PRED_LEN:, :]


# ---------------------------------- main --------------------------------------
if __name__ == "__main__":
    key = jax.random.PRNGKey(0)
    kx, km, kp = jax.random.split(key, 3)
    var_x = jax.random.normal(kx, (B, HIST_LEN, N_VARS), jnp.float32) * 2.0 + 1.0
    marker_x = jax.random.normal(km, (B, HIST_LEN, N_MARK), jnp.float32)
    params = init_params(kp)
    packed = pack_params(params)          # one-time packing, outside the per-call path

    out = jax.block_until_ready(itransformer_forward(var_x, marker_x, packed))
    ref = jax.block_until_ready(reference_forward(var_x, marker_x, params))

    assert out.shape == (B, PRED_LEN, N_VARS), out.shape
    max_err = float(jnp.max(jnp.abs(out - ref)))
    # Kernel uses bf16 MXU matmuls (weights merged per head at pack time); reference is
    # pure f32 in PyTorch order, so the bound reflects bf16 rounding (typically ~2-4e-2).
    assert max_err < 1.2e-1, f"max abs err = {max_err}"
    print("KERNEL_OK")
</pallas_src>

<mosaic_0001>
module attributes {stable_mosaic.version = 11 : i64} {
  func.func @itransformer_kernel(%arg0: i32, %arg1: memref<8x8xf32, #tpu.memory_space<vmem>>, %arg2: memref<8x32xbf16, #tpu.memory_space<vmem>>, %arg3: memref<1x32xf32, #tpu.memory_space<vmem>>, %arg4: memref<4x32x32xbf16, #tpu.memory_space<vmem>>, %arg5: memref<4x1x32xf32, #tpu.memory_space<vmem>>, %arg6: memref<4x32x32xbf16, #tpu.memory_space<vmem>>, %arg7: memref<2x1x32xf32, #tpu.memory_space<vmem>>, %arg8: memref<2x32x64xbf16, #tpu.memory_space<vmem>>, %arg9: memref<2x1x64xf32, #tpu.memory_space<vmem>>, %arg10: memref<2x64x32xbf16, #tpu.memory_space<vmem>>, %arg11: memref<2x1x32xf32, #tpu.memory_space<vmem>>, %arg12: memref<10x32xf32, #tpu.memory_space<vmem>>, %arg13: memref<32x128xbf16, #tpu.memory_space<vmem>>, %arg14: memref<1x128xf32, #tpu.memory_space<vmem>>, %arg15: memref<8x128xf32, #tpu.memory_space<vmem>>) attributes {dimension_semantics = [#tpu.dimension_semantics<parallel>], iteration_bounds = array<i64: 2>, scalar_prefetch = 0 : i64, scratch_operands = 0 : i64, tpu.core_type = #tpu.core_type<tc>, window_params = [{transform_indices = @transform_0, window_bounds = array<i64: 8, 8>}, {pipeline_mode = #tpu.pipeline_mode<synchronous>, transform_indices = @transform_1, window_bounds = array<i64: 8, 32>}, {pipeline_mode = #tpu.pipeline_mode<synchronous>, transform_indices = @transform_2, window_bounds = array<i64: 1, 32>}, {pipeline_mode = #tpu.pipeline_mode<synchronous>, transform_indices = @transform_3, window_bounds = array<i64: 4, 32, 32>}, {pipeline_mode = #tpu.pipeline_mode<synchronous>, transform_indices = @transform_4, window_bounds = array<i64: 4, 1, 32>}, {pipeline_mode = #tpu.pipeline_mode<synchronous>, transform_indices = @transform_5, window_bounds = array<i64: 4, 32, 32>}, {pipeline_mode = #tpu.pipeline_mode<synchronous>, transform_indices = @transform_6, window_bounds = array<i64: 2, 1, 32>}, {pipeline_mode = #tpu.pipeline_mode<synchronous>, transform_indices = @transform_7, window_bounds = array<i64: 2, 32, 64>}, {pipeline_mode = #tpu.pipeline_mode<synchronous>, transform_indices = @transform_8, window_bounds = array<i64: 2, 1, 64>}, {pipeline_mode = #tpu.pipeline_mode<synchronous>, transform_indices = @transform_9, window_bounds = array<i64: 2, 64, 32>}, {pipeline_mode = #tpu.pipeline_mode<synchronous>, transform_indices = @transform_10, window_bounds = array<i64: 2, 1, 32>}, {pipeline_mode = #tpu.pipeline_mode<synchronous>, transform_indices = @transform_11, window_bounds = array<i64: 10, 32>}, {pipeline_mode = #tpu.pipeline_mode<synchronous>, transform_indices = @transform_12, window_bounds = array<i64: 32, 128>}, {pipeline_mode = #tpu.pipeline_mode<synchronous>, transform_indices = @transform_13, window_bounds = array<i64: 1, 128>}, {transform_indices = @transform_14, window_bounds = array<i64: 8, 128>}]} {
    %c0 = arith.constant 0 : index
    %c0_0 = arith.constant 0 : index
    %0 = vector.load %arg1[%c0, %c0_0] : memref<8x8xf32, #tpu.memory_space<vmem>>, vector<8x8xf32>
    %1 = tpu.iota {dimensions = array<i32: 0>} : vector<8x1xi32>
    %c4_i32 = arith.constant 4 : i32
    %2 = vector.broadcast %c4_i32 : i32 to vector<8x1xi32>
    %3 = arith.cmpi slt, %1, %2 : vector<8x1xi32>
    %4 = arith.extui %3 : vector<8x1xi1> to vector<8x1xi32>
    %5 = arith.sitofp %4 : vector<8x1xi32> to vector<8x1xf32>
    %6 = tpu.iota {dimensions = array<i32: 1>} : vector<1x8xi32>
    %c7_i32 = arith.constant 7 : i32
    %7 = vector.broadcast %c7_i32 : i32 to vector<1x8xi32>
    %8 = arith.cmpi slt, %6, %7 : vector<1x8xi32>
    %cst = arith.constant 0.000000e+00 : f32
    %cst_1 = arith.constant -1.000000e+30 : f32
    %9 = vector.broadcast %cst : f32 to vector<1x8xf32>
    %10 = vector.broadcast %cst_1 : f32 to vector<1x8xf32>
    %11 = arith.select %8, %9, %10 : vector<1x8xi1>, vector<1x8xf32>
    %cst_2 = arith.constant dense<0.000000e+00> : vector<8xf32>
    %12 = vector.multi_reduction <add>, %0, %cst_2 [1] : vector<8x8xf32> to vector<8xf32>
    %13 = vector.shape_cast %12 : vector<8xf32> to vector<8x1xf32>
    %cst_3 = arith.constant 8.000000e+00 : f32
    %14 = vector.broadcast %cst_3 : f32 to vector<8x1xf32>
    %15 = arith.divf %13, %14 : vector<8x1xf32>
    %16 = vector.broadcast %15 : vector<8x1xf32> to vector<8x8xf32>
    %17 = arith.subf %0, %16 : vector<8x8xf32>
    %18 = arith.mulf %17, %17 : vector<8x8xf32>
    %cst_4 = arith.constant dense<0.000000e+00> : vector<8xf32>
    %19 = vector.multi_reduction <add>, %18, %cst_4 [1] : vector<8x8xf32> to vector<8xf32>
    %20 = vector.shape_cast %19 : vector<8xf32> to vector<8x1xf32>
    %cst_5 = arith.constant 8.000000e+00 : f32
    %21 = vector.broadcast %cst_5 : f32 to vector<8x1xf32>
    %22 = arith.divf %20, %21 : vector<8x1xf32>
    %cst_6 = arith.constant 9.99999974E-6 : f32
    %23 = vector.broadcast %cst_6 : f32 to vector<8x1xf32>
    %24 = arith.addf %22, %23 : vector<8x1xf32>
    %25 = math.sqrt %24 : vector<8x1xf32>
    %26 = arith.mulf %5, %15 : vector<8x1xf32>
    %27 = arith.mulf %5, %25 : vector<8x1xf32>
    %cst_7 = arith.constant 1.000000e+00 : f32
    %28 = vector.broadcast %cst_7 : f32 to vector<8x1xf32>
    %29 = arith.subf %28, %5 : vector<8x1xf32>
    %30 = arith.addf %27, %29 : vector<8x1xf32>
    %31 = vector.broadcast %26 : vector<8x1xf32> to vector<8x8xf32>
    %32 = arith.subf %0, %31 : vector<8x8xf32>
    %33 = vector.broadcast %30 : vector<8x1xf32> to vector<8x8xf32>
    %34 = arith.divf %32, %33 : vector<8x8xf32>
    %c0_8 = arith.constant 0 : index
    %c0_9 = arith.constant 0 : index
    %35 = vector.load %arg2[%c0_8, %c0_9] : memref<8x32xbf16, #tpu.memory_space<vmem>>, vector<8x32xbf16>
    %36 = arith.truncf %34 : vector<8x8xf32> to vector<8x8xbf16>
    %cst_10 = arith.constant dense<0.000000e+00> : vector<8x32xf32>
    %37 = tpu.matmul %36, %35, %cst_10 {dimension_numbers = #tpu.dot_dimension_numbers<[1], [0], [0], [1], [0, 0, 1, 1], [], []>} : vector<8x8xbf16>, vector<8x32xbf16>, vector<8x32xf32> -> vector<8x32xf32>
    %c0_11 = arith.constant 0 : index
    %c0_12 = arith.constant 0 : index
    %38 = vector.load %arg3[%c0_11, %c0_12] : memref<1x32xf32, #tpu.memory_space<vmem>>, vector<1x32xf32>
    %39 = vector.broadcast %38 : vector<1x32xf32> to vector<8x32xf32>
    %40 = arith.addf %37, %39 : vector<8x32xf32>
    %41 = arith.truncf %40 : vector<8x32xf32> to vector<8x32xbf16>
    %c0_13 = arith.constant 0 : index
    %c0_14 = arith.constant 0 : index
    %c0_15 = arith.constant 0 : index
    %42 = vector.load %arg4[%c0_13, %c0_14, %c0_15] : memref<4x32x32xbf16, #tpu.memory_space<vmem>>, vector<1x32x32xbf16>
    %43 = vector.shape_cast %42 : vector<1x32x32xbf16> to vector<32x32xbf16>
    %cst_16 = arith.constant dense<0.000000e+00> : vector<8x32xf32>
    %44 = tpu.matmul %41, %43, %cst_16 {dimension_numbers = #tpu.dot_dimension_numbers<[1], [0], [0], [1], [0, 0, 1, 1], [], []>} : vector<8x32xbf16>, vector<32x32xbf16>, vector<8x32xf32> -> vector<8x32xf32>
    %c0_17 = arith.constant 0 : index
    %c0_18 = arith.constant 0 : index
    %c0_19 = arith.constant 0 : index
    %45 = vector.load %arg5[%c0_17, %c0_18, %c0_19] : memref<4x1x32xf32, #tpu.memory_space<vmem>>, vector<1x1x32xf32>
    %46 = vector.shape_cast %45 : vector<1x1x32xf32> to vector<1x32xf32>
    %47 = vector.broadcast %46 : vector<1x32xf32> to vector<8x32xf32>
    %48 = arith.addf %44, %47 : vector<8x32xf32>
    %c1 = arith.constant 1 : index
    %c0_20 = arith.constant 0 : index
    %c0_21 = arith.constant 0 : index
    %49 = vector.load %arg4[%c1, %c0_20, %c0_21] : memref<4x32x32xbf16, #tpu.memory_space<vmem>>, vector<1x32x32xbf16>
    %50 = vector.shape_cast %49 : vector<1x32x32xbf16> to vector<32x32xbf16>
    %cst_22 = arith.constant dense<0.000000e+00> : vector<8x32xf32>
    %51 = tpu.matmul %41, %50, %cst_22 {dimension_numbers = #tpu.dot_dimension_numbers<[1], [0], [0], [1], [0, 0, 1, 1], [], []>} : vector<8x32xbf16>, vector<32x32xbf16>, vector<8x32xf32> -> vector<8x32xf32>
    %c1_23 = arith.constant 1 : index
    %c0_24 = arith.constant 0 : index
    %c0_25 = arith.constant 0 : index
    %52 = vector.load %arg5[%c1_23, %c0_24, %c0_25] : memref<4x1x32xf32, #tpu.memory_space<vmem>>, vector<1x1x32xf32>
    %53 = vector.shape_cast %52 : vector<1x1x32xf32> to vector<1x32xf32>
    %54 = vector.broadcast %53 : vector<1x32xf32> to vector<8x32xf32>
    %55 = arith.addf %51, %54 : vector<8x32xf32>
    %56 = tpu.concatenate %48, %55 in 0 : vector<8x32xf32>, vector<8x32xf32> -> vector<16x32xf32>
    %57 = arith.truncf %56 : vector<16x32xf32> to vector<16x32xbf16>
    %cst_26 = arith.constant dense<0.000000e+00> : vector<16x8xf32>
    %58 = tpu.matmul %57, %41, %cst_26 {dimension_numbers = #tpu.dot_dimension_numbers<[1], [1], [0], [0], [0, 0, 1, 0], [], []>} : vector<16x32xbf16>, vector<8x32xbf16>, vector<16x8xf32> -> vector<16x8xf32>
    %59 = vector.broadcast %11 : vector<1x8xf32> to vector<16x8xf32>
    %60 = arith.addf %58, %59 : vector<16x8xf32>
    %cst_27 = arith.constant dense<0xFF800000> : vector<16xf32>
    %61 = vector.multi_reduction <maximumf>, %60, %cst_27 [1] : vector<16x8xf32> to vector<16xf32>
    %62 = vector.shape_cast %61 : vector<16xf32> to vector<16x1xf32>
    %63 = vector.broadcast %62 : vector<16x1xf32> to vector<16x8xf32>
    %64 = arith.subf %60, %63 : vector<16x8xf32>
    %65 = math.exp %64 : vector<16x8xf32>
    %cst_28 = arith.constant dense<0.000000e+00> : vector<16xf32>
    %66 = vector.multi_reduction <add>, %65, %cst_28 [1] : vector<16x8xf32> to vector<16xf32>
    %67 = vector.shape_cast %66 : vector<16xf32> to vector<16x1xf32>
    %68 = tpu.reciprocal %67 {approx = true} : vector<16x1xf32> -> vector<16x1xf32>
    %69 = vector.broadcast %68 : vector<16x1xf32> to vector<16x8xf32>
    %70 = arith.mulf %65, %69 : vector<16x8xf32>
    %71 = arith.truncf %70 : vector<16x8xf32> to vector<16x8xbf16>
    %cst_29 = arith.constant dense<0.000000e+00> : vector<16x32xf32>
    %72 = tpu.matmul %71, %41, %cst_29 {dimension_numbers = #tpu.dot_dimension_numbers<[1], [0], [0], [1], [0, 0, 1, 1], [], []>} : vector<16x8xbf16>, vector<8x32xbf16>, vector<16x32xf32> -> vector<16x32xf32>
    %c0_30 = arith.constant 0 : index
    %c0_31 = arith.constant 0 : index
    %c0_32 = arith.constant 0 : index
    %73 = vector.load %arg7[%c0_30, %c0_31, %c0_32] : memref<2x1x32xf32, #tpu.memory_space<vmem>>, vector<1x1x32xf32>
    %74 = vector.shape_cast %73 : vector<1x1x32xf32> to vector<1x32xf32>
    %75 = vector.extract_strided_slice %72 {offsets = [0, 0], sizes = [8, 32], strides = [1, 1]} : vector<16x32xf32> to vector<8x32xf32>
    %c0_33 = arith.constant 0 : index
    %c0_34 = arith.constant 0 : index
    %c0_35 = arith.constant 0 : index
    %76 = vector.load %arg6[%c0_33, %c0_34, %c0_35] : memref<4x32x32xbf16, #tpu.memory_space<vmem>>, vector<1x32x32xbf16>
    %77 = vector.shape_cast %76 : vector<1x32x32xbf16> to vector<32x32xbf16>
    %78 = arith.truncf %75 : vector<8x32xf32> to vector<8x32xbf16>
    %cst_36 = arith.constant dense<0.000000e+00> : vector<8x32xf32>
    %79 = tpu.matmul %78, %77, %cst_36 {dimension_numbers = #tpu.dot_dimension_numbers<[1], [0], [0], [1], [0, 0, 1, 1], [], []>} : vector<8x32xbf16>, vector<32x32xbf16>, vector<8x32xf32> -> vector<8x32xf32>
    %80 = vector.broadcast %74 : vector<1x32xf32> to vector<8x32xf32>
    %81 = arith.addf %80, %79 : vector<8x32xf32>
    %82 = vector.extract_strided_slice %72 {offsets = [8, 0], sizes = [8, 32], strides = [1, 1]} : vector<16x32xf32> to vector<8x32xf32>
    %c1_37 = arith.constant 1 : index
    %c0_38 = arith.constant 0 : index
    %c0_39 = arith.constant 0 : index
    %83 = vector.load %arg6[%c1_37, %c0_38, %c0_39] : memref<4x32x32xbf16, #tpu.memory_space<vmem>>, vector<1x32x32xbf16>
    %84 = vector.shape_cast %83 : vector<1x32x32xbf16> to vector<32x32xbf16>
    %85 = arith.truncf %82 : vector<8x32xf32> to vector<8x32xbf16>
    %cst_40 = arith.constant dense<0.000000e+00> : vector<8x32xf32>
    %86 = tpu.matmul %85, %84, %cst_40 {dimension_numbers = #tpu.dot_dimension_numbers<[1], [0], [0], [1], [0, 0, 1, 1], [], []>} : vector<8x32xbf16>, vector<32x32xbf16>, vector<8x32xf32> -> vector<8x32xf32>
    %87 = arith.addf %81, %86 : vector<8x32xf32>
    %88 = arith.addf %40, %87 : vector<8x32xf32>
    %c0_41 = arith.constant 0 : index
    %c0_42 = arith.constant 0 : index
    %89 = vector.load %arg12[%c0_41, %c0_42] : memref<10x32xf32, #tpu.memory_space<vmem>>, vector<1x32xf32>
    %c1_43 = arith.constant 1 : index
    %c0_44 = arith.constant 0 : index
    %90 = vector.load %arg12[%c1_43, %c0_44] : memref<10x32xf32, #tpu.memory_space<vmem>>, vector<1x32xf32>
    %cst_45 = arith.constant dense<0.000000e+00> : vector<8xf32>
    %91 = vector.multi_reduction <add>, %88, %cst_45 [1] : vector<8x32xf32> to vector<8xf32>
    %92 = vector.shape_cast %91 : vector<8xf32> to vector<8x1xf32>
    %cst_46 = arith.constant 3.200000e+01 : f32
    %93 = vector.broadcast %cst_46 : f32 to vector<8x1xf32>
    %94 = arith.divf %92, %93 : vector<8x1xf32>
    %95 = vector.broadcast %94 : vector<8x1xf32> to vector<8x32xf32>
    %96 = arith.subf %88, %95 : vector<8x32xf32>
    %97 = arith.mulf %96, %96 : vector<8x32xf32>
    %cst_47 = arith.constant dense<0.000000e+00> : vector<8xf32>
    %98 = vector.multi_reduction <add>, %97, %cst_47 [1] : vector<8x32xf32> to vector<8xf32>
    %99 = vector.shape_cast %98 : vector<8xf32> to vector<8x1xf32>
    %cst_48 = arith.constant 3.200000e+01 : f32
    %100 = vector.broadcast %cst_48 : f32 to vector<8x1xf32>
    %101 = arith.divf %99, %100 : vector<8x1xf32>
    %cst_49 = arith.constant 9.99999974E-6 : f32
    %102 = vector.broadcast %cst_49 : f32 to vector<8x1xf32>
    %103 = arith.addf %101, %102 : vector<8x1xf32>
    %104 = math.rsqrt %103 : vector<8x1xf32>
    %105 = vector.broadcast %104 : vector<8x1xf32> to vector<8x32xf32>
    %106 = arith.mulf %96, %105 : vector<8x32xf32>
    %107 = vector.broadcast %89 : vector<1x32xf32> to vector<8x32xf32>
    %108 = arith.mulf %106, %107 : vector<8x32xf32>
    %109 = vector.broadcast %90 : vector<1x32xf32> to vector<8x32xf32>
    %110 = arith.addf %108, %109 : vector<8x32xf32>
    %c0_50 = arith.constant 0 : index
    %c0_51 = arith.constant 0 : index
    %c0_52 = arith.constant 0 : index
    %111 = vector.load %arg8[%c0_50, %c0_51, %c0_52] : memref<2x32x64xbf16, #tpu.memory_space<vmem>>, vector<1x32x64xbf16>
    %112 = vector.shape_cast %111 : vector<1x32x64xbf16> to vector<32x64xbf16>
    %113 = arith.truncf %110 : vector<8x32xf32> to vector<8x32xbf16>
    %cst_53 = arith.constant dense<0.000000e+00> : vector<8x64xf32>
    %114 = tpu.matmul %113, %112, %cst_53 {dimension_numbers = #tpu.dot_dimension_numbers<[1], [0], [0], [1], [0, 0, 1, 1], [], []>} : vector<8x32xbf16>, vector<32x64xbf16>, vector<8x64xf32> -> vector<8x64xf32>
    %c0_54 = arith.constant 0 : index
    %c0_55 = arith.constant 0 : index
    %c0_56 = arith.constant 0 : index
    %115 = vector.load %arg9[%c0_54, %c0_55, %c0_56] : memref<2x1x64xf32, #tpu.memory_space<vmem>>, vector<1x1x64xf32>
    %116 = vector.shape_cast %115 : vector<1x1x64xf32> to vector<1x64xf32>
    %117 = vector.broadcast %116 : vector<1x64xf32> to vector<8x64xf32>
    %118 = arith.addf %114, %117 : vector<8x64xf32>
    %cst_57 = arith.constant 0.000000e+00 : f32
    %119 = vector.broadcast %cst_57 : f32 to vector<8x64xf32>
    %120 = arith.maximumf %118, %119 : vector<8x64xf32>
    %c0_58 = arith.constant 0 : index
    %c0_59 = arith.constant 0 : index
    %c0_60 = arith.constant 0 : index
    %121 = vector.load %arg10[%c0_58, %c0_59, %c0_60] : memref<2x64x32xbf16, #tpu.memory_space<vmem>>, vector<1x64x32xbf16>
    %122 = vector.shape_cast %121 : vector<1x64x32xbf16> to vector<64x32xbf16>
    %123 = arith.truncf %120 : vector<8x64xf32> to vector<8x64xbf16>
    %cst_61 = arith.constant dense<0.000000e+00> : vector<8x32xf32>
    %124 = tpu.matmul %123, %122, %cst_61 {dimension_numbers = #tpu.dot_dimension_numbers<[1], [0], [0], [1], [0, 0, 1, 1], [], []>} : vector<8x64xbf16>, vector<64x32xbf16>, vector<8x32xf32> -> vector<8x32xf32>
    %c0_62 = arith.constant 0 : index
    %c0_63 = arith.constant 0 : index
    %c0_64 = arith.constant 0 : index
    %125 = vector.load %arg11[%c0_62, %c0_63, %c0_64] : memref<2x1x32xf32, #tpu.memory_space<vmem>>, vector<1x1x32xf32>
    %126 = vector.shape_cast %125 : vector<1x1x32xf32> to vector<1x32xf32>
    %127 = vector.broadcast %126 : vector<1x32xf32> to vector<8x32xf32>
    %128 = arith.addf %124, %127 : vector<8x32xf32>
    %129 = arith.addf %110, %128 : vector<8x32xf32>
    %c2 = arith.constant 2 : index
    %c0_65 = arith.constant 0 : index
    %130 = vector.load %arg12[%c2, %c0_65] : memref<10x32xf32, #tpu.memory_space<vmem>>, vector<1x32xf32>
    %c3 = arith.constant 3 : index
    %c0_66 = arith.constant 0 : index
    %131 = vector.load %arg12[%c3, %c0_66] : memref<10x32xf32, #tpu.memory_space<vmem>>, vector<1x32xf32>
    %cst_67 = arith.constant dense<0.000000e+00> : vector<8xf32>
    %132 = vector.multi_reduction <add>, %129, %cst_67 [1] : vector<8x32xf32> to vector<8xf32>
    %133 = vector.shape_cast %132 : vector<8xf32> to vector<8x1xf32>
    %cst_68 = arith.constant 3.200000e+01 : f32
    %134 = vector.broadcast %cst_68 : f32 to vector<8x1xf32>
    %135 = arith.divf %133, %134 : vector<8x1xf32>
    %136 = vector.broadcast %135 : vector<8x1xf32> to vector<8x32xf32>
    %137 = arith.subf %129, %136 : vector<8x32xf32>
    %138 = arith.mulf %137, %137 : vector<8x32xf32>
    %cst_69 = arith.constant dense<0.000000e+00> : vector<8xf32>
    %139 = vector.multi_reduction <add>, %138, %cst_69 [1] : vector<8x32xf32> to vector<8xf32>
    %140 = vector.shape_cast %139 : vector<8xf32> to vector<8x1xf32>
    %cst_70 = arith.constant 3.200000e+01 : f32
    %141 = vector.broadcast %cst_70 : f32 to vector<8x1xf32>
    %142 = arith.divf %140, %141 : vector<8x1xf32>
    %cst_71 = arith.constant 9.99999974E-6 : f32
    %143 = vector.broadcast %cst_71 : f32 to vector<8x1xf32>
    %144 = arith.addf %142, %143 : vector<8x1xf32>
    %145 = math.rsqrt %144 : vector<8x1xf32>
    %146 = vector.broadcast %145 : vector<8x1xf32> to vector<8x32xf32>
    %147 = arith.mulf %137, %146 : vector<8x32xf32>
    %148 = vector.broadcast %130 : vector<1x32xf32> to vector<8x32xf32>
    %149 = arith.mulf %147, %148 : vector<8x32xf32>
    %150 = vector.broadcast %131 : vector<1x32xf32> to vector<8x32xf32>
    %151 = arith.addf %149, %150 : vector<8x32xf32>
    %152 = arith.truncf %151 : vector<8x32xf32> to vector<8x32xbf16>
    %c2_72 = arith.constant 2 : index
    %c0_73 = arith.constant 0 : index
    %c0_74 = arith.constant 0 : index
    %153 = vector.load %arg4[%c2_72, %c0_73, %c0_74] : memref<4x32x32xbf16, #tpu.memory_space<vmem>>, vector<1x32x32xbf16>
    %154 = vector.shape_cast %153 : vector<1x32x32xbf16> to vector<32x32xbf16>
    %cst_75 = arith.constant dense<0.000000e+00> : vector<8x32xf32>
    %155 = tpu.matmul %152, %154, %cst_75 {dimension_numbers = #tpu.dot_dimension_numbers<[1], [0], [0], [1], [0, 0, 1, 1], [], []>} : vector<8x32xbf16>, vector<32x32xbf16>, vector<8x32xf32> -> vector<8x32xf32>
    %c2_76 = arith.constant 2 : index
    %c0_77 = arith.constant 0 : index
    %c0_78 = arith.constant 0 : index
    %156 = vector.load %arg5[%c2_76, %c0_77, %c0_78] : memref<4x1x32xf32, #tpu.memory_space<vmem>>, vector<1x1x32xf32>
    %157 = vector.shape_cast %156 : vector<1x1x32xf32> to vector<1x32xf32>
    %158 = vector.broadcast %157 : vector<1x32xf32> to vector<8x32xf32>
    %159 = arith.addf %155, %158 : vector<8x32xf32>
    %c3_79 = arith.constant 3 : index
    %c0_80 = arith.constant 0 : index
    %c0_81 = arith.constant 0 : index
    %160 = vector.load %arg4[%c3_79, %c0_80, %c0_81] : memref<4x32x32xbf16, #tpu.memory_space<vmem>>, vector<1x32x32xbf16>
    %161 = vector.shape_cast %160 : vector<1x32x32xbf16> to vector<32x32xbf16>
    %cst_82 = arith.constant dense<0.000000e+00> : vector<8x32xf32>
    %162 = tpu.matmul %152, %161, %cst_82 {dimension_numbers = #tpu.dot_dimension_numbers<[1], [0], [0], [1], [0, 0, 1, 1], [], []>} : vector<8x32xbf16>, vector<32x32xbf16>, vector<8x32xf32> -> vector<8x32xf32>
    %c3_83 = arith.constant 3 : index
    %c0_84 = arith.constant 0 : index
    %c0_85 = arith.constant 0 : index
    %163 = vector.load %arg5[%c3_83, %c0_84, %c0_85] : memref<4x1x32xf32, #tpu.memory_space<vmem>>, vector<1x1x32xf32>
    %164 = vector.shape_cast %163 : vector<1x1x32xf32> to vector<1x32xf32>
    %165 = vector.broadcast %164 : vector<1x32xf32> to vector<8x32xf32>
    %166 = arith.addf %162, %165 : vector<8x32xf32>
    %167 = tpu.concatenate %159, %166 in 0 : vector<8x32xf32>, vector<8x32xf32> -> vector<16x32xf32>
    %168 = arith.truncf %167 : vector<16x32xf32> to vector<16x32xbf16>
    %cst_86 = arith.constant dense<0.000000e+00> : vector<16x8xf32>
    %169 = tpu.matmul %168, %152, %cst_86 {dimension_numbers = #tpu.dot_dimension_numbers<[1], [1], [0], [0], [0, 0, 1, 0], [], []>} : vector<16x32xbf16>, vector<8x32xbf16>, vector<16x8xf32> -> vector<16x8xf32>
    %170 = vector.broadcast %11 : vector<1x8xf32> to vector<16x8xf32>
    %171 = arith.addf %169, %170 : vector<16x8xf32>
    %cst_87 = arith.constant dense<0xFF800000> : vector<16xf32>
    %172 = vector.multi_reduction <maximumf>, %171, %cst_87 [1] : vector<16x8xf32> to vector<16xf32>
    %173 = vector.shape_cast %172 : vector<16xf32> to vector<16x1xf32>
    %174 = vector.broadcast %173 : vector<16x1xf32> to vector<16x8xf32>
    %175 = arith.subf %171, %174 : vector<16x8xf32>
    %176 = math.exp %175 : vector<16x8xf32>
    %cst_88 = arith.constant dense<0.000000e+00> : vector<16xf32>
    %177 = vector.multi_reduction <add>, %176, %cst_88 [1] : vector<16x8xf32> to vector<16xf32>
    %178 = vector.shape_cast %177 : vector<16xf32> to vector<16x1xf32>
    %179 = tpu.reciprocal %178 {approx = true} : vector<16x1xf32> -> vector<16x1xf32>
    %180 = vector.broadcast %179 : vector<16x1xf32> to vector<16x8xf32>
    %181 = arith.mulf %176, %180 : vector<16x8xf32>
    %182 = arith.truncf %181 : vector<16x8xf32> to vector<16x8xbf16>
    %cst_89 = arith.constant dense<0.000000e+00> : vector<16x32xf32>
    %183 = tpu.matmul %182, %152, %cst_89 {dimension_numbers = #tpu.dot_dimension_numbers<[1], [0], [0], [1], [0, 0, 1, 1], [], []>} : vector<16x8xbf16>, vector<8x32xbf16>, vector<16x32xf32> -> vector<16x32xf32>
    %c1_90 = arith.constant 1 : index
    %c0_91 = arith.constant 0 : index
    %c0_92 = arith.constant 0 : index
    %184 = vector.load %arg7[%c1_90, %c0_91, %c0_92] : memref<2x1x32xf32, #tpu.memory_space<vmem>>, vector<1x1x32xf32>
    %185 = vector.shape_cast %184 : vector<1x1x32xf32> to vector<1x32xf32>
    %186 = vector.extract_strided_slice %183 {offsets = [0, 0], sizes = [8, 32], strides = [1, 1]} : vector<16x32xf32> to vector<8x32xf32>
    %c2_93 = arith.constant 2 : index
    %c0_94 = arith.constant 0 : index
    %c0_95 = arith.constant 0 : index
    %187 = vector.load %arg6[%c2_93, %c0_94, %c0_95] : memref<4x32x32xbf16, #tpu.memory_space<vmem>>, vector<1x32x32xbf16>
    %188 = vector.shape_cast %187 : vector<1x32x32xbf16> to vector<32x32xbf16>
    %189 = arith.truncf %186 : vector<8x32xf32> to vector<8x32xbf16>
    %cst_96 = arith.constant dense<0.000000e+00> : vector<8x32xf32>
    %190 = tpu.matmul %189, %188, %cst_96 {dimension_numbers = #tpu.dot_dimension_numbers<[1], [0], [0], [1], [0, 0, 1, 1], [], []>} : vector<8x32xbf16>, vector<32x32xbf16>, vector<8x32xf32> -> vector<8x32xf32>
    %191 = vector.broadcast %185 : vector<1x32xf32> to vector<8x32xf32>
    %192 = arith.addf %191, %190 : vector<8x32xf32>
    %193 = vector.extract_strided_slice %183 {offsets = [8, 0], sizes = [8, 32], strides = [1, 1]} : vector<16x32xf32> to vector<8x32xf32>
    %c3_97 = arith.constant 3 : index
    %c0_98 = arith.constant 0 : index
    %c0_99 = arith.constant 0 : index
    %194 = vector.load %arg6[%c3_97, %c0_98, %c0_99] : memref<4x32x32xbf16, #tpu.memory_space<vmem>>, vector<1x32x32xbf16>
    %195 = vector.shape_cast %194 : vector<1x32x32xbf16> to vector<32x32xbf16>
    %196 = arith.truncf %193 : vector<8x32xf32> to vector<8x32xbf16>
    %cst_100 = arith.constant dense<0.000000e+00> : vector<8x32xf32>
    %197 = tpu.matmul %196, %195, %cst_100 {dimension_numbers = #tpu.dot_dimension_numbers<[1], [0], [0], [1], [0, 0, 1, 1], [], []>} : vector<8x32xbf16>, vector<32x32xbf16>, vector<8x32xf32> -> vector<8x32xf32>
    %198 = arith.addf %192, %197 : vector<8x32xf32>
    %199 = arith.addf %151, %198 : vector<8x32xf32>
    %c4 = arith.constant 4 : index
    %c0_101 = arith.constant 0 : index
    %200 = vector.load %arg12[%c4, %c0_101] : memref<10x32xf32, #tpu.memory_space<vmem>>, vector<1x32xf32>
    %c5 = arith.constant 5 : index
    %c0_102 = arith.constant 0 : index
    %201 = vector.load %arg12[%c5, %c0_102] : memref<10x32xf32, #tpu.memory_space<vmem>>, vector<1x32xf32>
    %cst_103 = arith.constant dense<0.000000e+00> : vector<8xf32>
    %202 = vector.multi_reduction <add>, %199, %cst_103 [1] : vector<8x32xf32> to vector<8xf32>
    %203 = vector.shape_cast %202 : vector<8xf32> to vector<8x1xf32>
    %cst_104 = arith.constant 3.200000e+01 : f32
    %204 = vector.broadcast %cst_104 : f32 to vector<8x1xf32>
    %205 = arith.divf %203, %204 : vector<8x1xf32>
    %206 = vector.broadcast %205 : vector<8x1xf32> to vector<8x32xf32>
    %207 = arith.subf %199, %206 : vector<8x32xf32>
    %208 = arith.mulf %207, %207 : vector<8x32xf32>
    %cst_105 = arith.constant dense<0.000000e+00> : vector<8xf32>
    %209 = vector.multi_reduction <add>, %208, %cst_105 [1] : vector<8x32xf32> to vector<8xf32>
    %210 = vector.shape_cast %209 : vector<8xf32> to vector<8x1xf32>
    %cst_106 = arith.constant 3.200000e+01 : f32
    %211 = vector.broadcast %cst_106 : f32 to vector<8x1xf32>
    %212 = arith.divf %210, %211 : vector<8x1xf32>
    %cst_107 = arith.constant 9.99999974E-6 : f32
    %213 = vector.broadcast %cst_107 : f32 to vector<8x1xf32>
    %214 = arith.addf %212, %213 : vector<8x1xf32>
    %215 = math.rsqrt %214 : vector<8x1xf32>
    %216 = vector.broadcast %215 : vector<8x1xf32> to vector<8x32xf32>
    %217 = arith.mulf %207, %216 : vector<8x32xf32>
    %218 = vector.broadcast %200 : vector<1x32xf32> to vector<8x32xf32>
    %219 = arith.mulf %217, %218 : vector<8x32xf32>
    %220 = vector.broadcast %201 : vector<1x32xf32> to vector<8x32xf32>
    %221 = arith.addf %219, %220 : vector<8x32xf32>
    %c1_108 = arith.constant 1 : index
    %c0_109 = arith.constant 0 : index
    %c0_110 = arith.constant 0 : index
    %222 = vector.load %arg8[%c1_108, %c0_109, %c0_110] : memref<2x32x64xbf16, #tpu.memory_space<vmem>>, vector<1x32x64xbf16>
    %223 = vector.shape_cast %222 : vector<1x32x64xbf16> to vector<32x64xbf16>
    %224 = arith.truncf %221 : vector<8x32xf32> to vector<8x32xbf16>
    %cst_111 = arith.constant dense<0.000000e+00> : vector<8x64xf32>
    %225 = tpu.matmul %224, %223, %cst_111 {dimension_numbers = #tpu.dot_dimension_numbers<[1], [0], [0], [1], [0, 0, 1, 1], [], []>} : vector<8x32xbf16>, vector<32x64xbf16>, vector<8x64xf32> -> vector<8x64xf32>
    %c1_112 = arith.constant 1 : index
    %c0_113 = arith.constant 0 : index
    %c0_114 = arith.constant 0 : index
    %226 = vector.load %arg9[%c1_112, %c0_113, %c0_114] : memref<2x1x64xf32, #tpu.memory_space<vmem>>, vector<1x1x64xf32>
    %227 = vector.shape_cast %226 : vector<1x1x64xf32> to vector<1x64xf32>
    %228 = vector.broadcast %227 : vector<1x64xf32> to vector<8x64xf32>
    %229 = arith.addf %225, %228 : vector<8x64xf32>
    %cst_115 = arith.constant 0.000000e+00 : f32
    %230 = vector.broadcast %cst_115 : f32 to vector<8x64xf32>
    %231 = arith.maximumf %229, %230 : vector<8x64xf32>
    %c1_116 = arith.constant 1 : index
    %c0_117 = arith.constant 0 : index
    %c0_118 = arith.constant 0 : index
    %232 = vector.load %arg10[%c1_116, %c0_117, %c0_118] : memref<2x64x32xbf16, #tpu.memory_space<vmem>>, vector<1x64x32xbf16>
    %233 = vector.shape_cast %232 : vector<1x64x32xbf16> to vector<64x32xbf16>
    %234 = arith.truncf %231 : vector<8x64xf32> to vector<8x64xbf16>
    %cst_119 = arith.constant dense<0.000000e+00> : vector<8x32xf32>
    %235 = tpu.matmul %234, %233, %cst_119 {dimension_numbers = #tpu.dot_dimension_numbers<[1], [0], [0], [1], [0, 0, 1, 1], [], []>} : vector<8x64xbf16>, vector<64x32xbf16>, vector<8x32xf32> -> vector<8x32xf32>
    %c1_120 = arith.constant 1 : index
    %c0_121 = arith.constant 0 : index
    %c0_122 = arith.constant 0 : index
    %236 = vector.load %arg11[%c1_120, %c0_121, %c0_122] : memref<2x1x32xf32, #tpu.memory_space<vmem>>, vector<1x1x32xf32>
    %237 = vector.shape_cast %236 : vector<1x1x32xf32> to vector<1x32xf32>
    %238 = vector.broadcast %237 : vector<1x32xf32> to vector<8x32xf32>
    %239 = arith.addf %235, %238 : vector<8x32xf32>
    %240 = arith.addf %221, %239 : vector<8x32xf32>
    %c6 = arith.constant 6 : index
    %c0_123 = arith.constant 0 : index
    %241 = vector.load %arg12[%c6, %c0_123] : memref<10x32xf32, #tpu.memory_space<vmem>>, vector<1x32xf32>
    %c7 = arith.constant 7 : index
    %c0_124 = arith.constant 0 : index
    %242 = vector.load %arg12[%c7, %c0_124] : memref<10x32xf32, #tpu.memory_space<vmem>>, vector<1x32xf32>
    %cst_125 = arith.constant dense<0.000000e+00> : vector<8xf32>
    %243 = vector.multi_reduction <add>, %240, %cst_125 [1] : vector<8x32xf32> to vector<8xf32>
    %244 = vector.shape_cast %243 : vector<8xf32> to vector<8x1xf32>
    %cst_126 = arith.constant 3.200000e+01 : f32
    %245 = vector.broadcast %cst_126 : f32 to vector<8x1xf32>
    %246 = arith.divf %244, %245 : vector<8x1xf32>
    %247 = vector.broadcast %246 : vector<8x1xf32> to vector<8x32xf32>
    %248 = arith.subf %240, %247 : vector<8x32xf32>
    %249 = arith.mulf %248, %248 : vector<8x32xf32>
    %cst_127 = arith.constant dense<0.000000e+00> : vector<8xf32>
    %250 = vector.multi_reduction <add>, %249, %cst_127 [1] : vector<8x32xf32> to vector<8xf32>
    %251 = vector.shape_cast %250 : vector<8xf32> to vector<8x1xf32>
    %cst_128 = arith.constant 3.200000e+01 : f32
    %252 = vector.broadcast %cst_128 : f32 to vector<8x1xf32>
    %253 = arith.divf %251, %252 : vector<8x1xf32>
    %cst_129 = arith.constant 9.99999974E-6 : f32
    %254 = vector.broadcast %cst_129 : f32 to vector<8x1xf32>
    %255 = arith.addf %253, %254 : vector<8x1xf32>
    %256 = math.rsqrt %255 : vector<8x1xf32>
    %257 = vector.broadcast %256 : vector<8x1xf32> to vector<8x32xf32>
    %258 = arith.mulf %248, %257 : vector<8x32xf32>
    %259 = vector.broadcast %241 : vector<1x32xf32> to vector<8x32xf32>
    %260 = arith.mulf %258, %259 : vector<8x32xf32>
    %261 = vector.broadcast %242 : vector<1x32xf32> to vector<8x32xf32>
    %262 = arith.addf %260, %261 : vector<8x32xf32>
    %c8 = arith.constant 8 : index
    %c0_130 = arith.constant 0 : index
    %263 = vector.load %arg12[%c8, %c0_130] : memref<10x32xf32, #tpu.memory_space<vmem>>, vector<1x32xf32>
    %c9 = arith.constant 9 : index
    %c0_131 = arith.constant 0 : index
    %264 = vector.load %arg12[%c9, %c0_131] : memref<10x32xf32, #tpu.memory_space<vmem>>, vector<1x32xf32>
    %cst_132 = arith.constant dense<0.000000e+00> : vector<8xf32>
    %265 = vector.multi_reduction <add>, %262, %cst_132 [1] : vector<8x32xf32> to vector<8xf32>
    %266 = vector.shape_cast %265 : vector<8xf32> to vector<8x1xf32>
    %cst_133 = arith.constant 3.200000e+01 : f32
    %267 = vector.broadcast %cst_133 : f32 to vector<8x1xf32>
    %268 = arith.divf %266, %267 : vector<8x1xf32>
    %269 = vector.broadcast %268 : vector<8x1xf32> to vector<8x32xf32>
    %270 = arith.subf %262, %269 : vector<8x32xf32>
    %271 = arith.mulf %270, %270 : vector<8x32xf32>
    %cst_134 = arith.constant dense<0.000000e+00> : vector<8xf32>
    %272 = vector.multi_reduction <add>, %271, %cst_134 [1] : vector<8x32xf32> to vector<8xf32>
    %273 = vector.shape_cast %272 : vector<8xf32> to vector<8x1xf32>
    %cst_135 = arith.constant 3.200000e+01 : f32
    %274 = vector.broadcast %cst_135 : f32 to vector<8x1xf32>
    %275 = arith.divf %273, %274 : vector<8x1xf32>
    %cst_136 = arith.constant 9.99999974E-6 : f32
    %276 = vector.broadcast %cst_136 : f32 to vector<8x1xf32>
    %277 = arith.addf %275, %276 : vector<8x1xf32>
    %278 = math.rsqrt %277 : vector<8x1xf32>
    %279 = vector.broadcast %278 : vector<8x1xf32> to vector<8x32xf32>
    %280 = arith.mulf %270, %279 : vector<8x32xf32>
    %281 = vector.broadcast %263 : vector<1x32xf32> to vector<8x32xf32>
    %282 = arith.mulf %280, %281 : vector<8x32xf32>
    %283 = vector.broadcast %264 : vector<1x32xf32> to vector<8x32xf32>
    %284 = arith.addf %282, %283 : vector<8x32xf32>
    %c0_137 = arith.constant 0 : index
    %c0_138 = arith.constant 0 : index
    %285 = vector.load %arg13[%c0_137, %c0_138] : memref<32x128xbf16, #tpu.memory_space<vmem>>, vector<32x128xbf16>
    %286 = arith.truncf %284 : vector<8x32xf32> to vector<8x32xbf16>
    %cst_139 = arith.constant dense<0.000000e+00> : vector<8x128xf32>
    %287 = tpu.matmul %286, %285, %cst_139 {dimension_numbers = #tpu.dot_dimension_numbers<[1], [0], [0], [1], [0, 0, 1, 1], [], []>} : vector<8x32xbf16>, vector<32x128xbf16>, vector<8x128xf32> -> vector<8x128xf32>
    %c0_140 = arith.constant 0 : index
    %c0_141 = arith.constant 0 : index
    %288 = vector.load %arg14[%c0_140, %c0_141] : memref<1x128xf32, #tpu.memory_space<vmem>>, vector<1x128xf32>
    %289 = vector.broadcast %288 : vector<1x128xf32> to vector<8x128xf32>
    %290 = arith.addf %287, %289 : vector<8x128xf32>
    %291 = vector.broadcast %30 : vector<8x1xf32> to vector<8x128xf32>
    %292 = arith.mulf %290, %291 : vector<8x128xf32>
    %293 = vector.broadcast %26 : vector<8x1xf32> to vector<8x128xf32>
    %294 = arith.addf %292, %293 : vector<8x128xf32>
    %c0_142 = arith.constant 0 : index
    %c0_143 = arith.constant 0 : index
    %295 = vector.load %arg15[%c0_142, %c0_143] : memref<8x128xf32, #tpu.memory_space<vmem>>, vector<8x128xf32>
    tpu.vector_store %arg15[%c0_142, %c0_143], %294 {strides = array<i32>} : memref<8x128xf32, #tpu.memory_space<vmem>>, vector<8x128xf32>,
    return
  }
  func.func @transform_0(%arg0: i32) -> (i32, i32) {
    %c0_i32 = arith.constant 0 : i32
    %c0_i32_0 = arith.constant 0 : i32
    return %arg0, %c0_i32 : i32, i32
  }
  func.func @transform_1(%arg0: i32) -> (i32, i32) {
    %c0_i32 = arith.constant 0 : i32
    %c0_i32_0 = arith.constant 0 : i32
    %c0_i32_1 = arith.constant 0 : i32
    return %c0_i32, %c0_i32_0 : i32, i32
  }
  func.func @transform_2(%arg0: i32) -> (i32, i32) {
    %c0_i32 = arith.constant 0 : i32
    %c0_i32_0 = arith.constant 0 : i32
    %c0_i32_1 = arith.constant 0 : i32
    return %c0_i32, %c0_i32_0 : i32, i32
  }
  func.func @transform_3(%arg0: i32) -> (i32, i32, i32) {
    %c0_i32 = arith.constant 0 : i32
    %c0_i32_0 = arith.constant 0 : i32
    %c0_i32_1 = arith.constant 0 : i32
    %c0_i32_2 = arith.constant 0 : i32
    return %c0_i32, %c0_i32_0, %c0_i32_1 : i32, i32, i32
  }
  func.func @transform_4(%arg0: i32) -> (i32, i32, i32) {
    %c0_i32 = arith.constant 0 : i32
    %c0_i32_0 = arith.constant 0 : i32
    %c0_i32_1 = arith.constant 0 : i32
    %c0_i32_2 = arith.constant 0 : i32
    return %c0_i32, %c0_i32_0, %c0_i32_1 : i32, i32, i32
  }
  func.func @transform_5(%arg0: i32) -> (i32, i32, i32) {
    %c0_i32 = arith.constant 0 : i32
    %c0_i32_0 = arith.constant 0 : i32
    %c0_i32_1 = arith.constant 0 : i32
    %c0_i32_2 = arith.constant 0 : i32
    return %c0_i32, %c0_i32_0, %c0_i32_1 : i32, i32, i32
  }
  func.func @transform_6(%arg0: i32) -> (i32, i32, i32) {
    %c0_i32 = arith.constant 0 : i32
    %c0_i32_0 = arith.constant 0 : i32
    %c0_i32_1 = arith.constant 0 : i32
    %c0_i32_2 = arith.constant 0 : i32
    return %c0_i32, %c0_i32_0, %c0_i32_1 : i32, i32, i32
  }
  func.func @transform_7(%arg0: i32) -> (i32, i32, i32) {
    %c0_i32 = arith.constant 0 : i32
    %c0_i32_0 = arith.constant 0 : i32
    %c0_i32_1 = arith.constant 0 : i32
    %c0_i32_2 = arith.constant 0 : i32
    return %c0_i32, %c0_i32_0, %c0_i32_1 : i32, i32, i32
  }
  func.func @transform_8(%arg0: i32) -> (i32, i32, i32) {
    %c0_i32 = arith.constant 0 : i32
    %c0_i32_0 = arith.constant 0 : i32
    %c0_i32_1 = arith.constant 0 : i32
    %c0_i32_2 = arith.constant 0 : i32
    return %c0_i32, %c0_i32_0, %c0_i32_1 : i32, i32, i32
  }
  func.func @transform_9(%arg0: i32) -> (i32, i32, i32) {
    %c0_i32 = arith.constant 0 : i32
    %c0_i32_0 = arith.constant 0 : i32
    %c0_i32_1 = arith.constant 0 : i32
    %c0_i32_2 = arith.constant 0 : i32
    return %c0_i32, %c0_i32_0, %c0_i32_1 : i32, i32, i32
  }
  func.func @transform_10(%arg0: i32) -> (i32, i32, i32) {
    %c0_i32 = arith.constant 0 : i32
    %c0_i32_0 = arith.constant 0 : i32
    %c0_i32_1 = arith.constant 0 : i32
    %c0_i32_2 = arith.constant 0 : i32
    return %c0_i32, %c0_i32_0, %c0_i32_1 : i32, i32, i32
  }
  func.func @transform_11(%arg0: i32) -> (i32, i32) {
    %c0_i32 = arith.constant 0 : i32
    %c0_i32_0 = arith.constant 0 : i32
    %c0_i32_1 = arith.constant 0 : i32
    return %c0_i32, %c0_i32_0 : i32, i32
  }
  func.func @transform_12(%arg0: i32) -> (i32, i32) {
    %c0_i32 = arith.constant 0 : i32
    %c0_i32_0 = arith.constant 0 : i32
    %c0_i32_1 = arith.constant 0 : i32
    return %c0_i32, %c0_i32_0 : i32, i32
  }
  func.func @transform_13(%arg0: i32) -> (i32, i32) {
    %c0_i32 = arith.constant 0 : i32
    %c0_i32_0 = arith.constant 0 : i32
    %c0_i32_1 = arith.constant 0 : i32
    return %c0_i32, %c0_i32_0 : i32, i32
  }
  func.func @transform_14(%arg0: i32) -> (i32, i32) {
    %c0_i32 = arith.constant 0 : i32
    %c0_i32_0 = arith.constant 0 : i32
    return %arg0, %c0_i32 : i32, i32
  }
}

</mosaic_0001>

<bundles_post_ra>
// kernel: itransformer_forward.1
= control target key start
LH: loop header
LB: loop body
LE: loop exit
PB: predicated region body
PF: predicated region fallthrough
CT: control target
= control target key end

     0   :  { %s3307_s0 = inlined_call_operand.vmem [shape: f32[16,8], index: 0, kind: input, shape index: {}]   ;;  %s3308_s1 = inlined_call_operand.vmem [shape: bf16[8,32], index: 1, kind: input, shape index: {}]   ;;  %s3309_s2 = inlined_call_operand.hbm [shape: f32[1,32], index: 2, kind: input, shape index: {}]   ;;  %s3310_s3 = inlined_call_operand.vmem [shape: bf16[4,32,32], index: 3, kind: input, shape index: {}]   ;;  %s3311_s4 = inlined_call_operand.hbm [shape: f32[4,1,32], index: 4, kind: input, shape index: {}]   ;;  %s3312_s5 = inlined_call_operand.vmem [shape: bf16[4,32,32], index: 5, kind: input, shape index: {}]   ;;  %s3313_s6 = inlined_call_operand.hbm [shape: f32[2,1,32], index: 6, kind: input, shape index: {}]   ;;  %s3314_s7 = inlined_call_operand.hbm [shape: bf16[2,32,64], index: 7, kind: input, shape index: {}]   ;;  %s3315_s8 = inlined_call_operand.hbm [shape: f32[2,1,64], index: 8, kind: input, shape index: {}]   ;;  %s3316_s9 = inlined_call_operand.vmem [shape: bf16[2,64,32], index: 9, kind: input, shape index: {}]   ;;  %s3317_s10 = inlined_call_operand.hbm [shape: f32[2,1,32], index: 10, kind: input, shape index: {}]   ;;  %s3318_s11 = inlined_call_operand.hbm [shape: f32[10,32], index: 11, kind: input, shape index: {}]   ;;  %s3319_s12 = inlined_call_operand.hbm [shape: bf16[32,128], index: 12, kind: input, shape index: {}]   ;;  %s3320_s13 = inlined_call_operand.hbm [shape: f32[1,128], index: 13, kind: input, shape index: {}]   ;;  %s3321_s14 = inlined_call_operand.vmem [shape: f32[16,128], index: 14, kind: output, shape index: {}]  }
   0x1   :  { %3328 = sst [smem:[#allocation21_spill]] %s3311_s4 }
   0x2   :  { %19 = vsyncpa [#allocation3], 0 }
   0x3   :  { %20 = vsyncpa [#allocation5], 0 }
   0x4   :  { %21 = vsyncpa [#allocation8], 0 }
   0x5   :  { %22 = vsyncpa [#allocation11], 0 }
   0x6   :  { %23 = vsyncpa [#allocation14], 0  ;;  %s2937_s29 = smov 0  }
   0x7 LB: > { %s2844_s30 = smov [#allocation4]   ;;  %s2943_s16 = sadd.s32 4294967295, %s2842_s29   ;;  %s2842_s29 = sphi %s2937_s29, %s29_s29  }
   0x8   : > { %s388_s15 = sshll.u32 %s2844_s30, 4  ;;  %p2091_p0 = scmp.ge.s32.totalorder %s2842_s29, 1  ;;  %s389_s15 = int_to_ptr.vmem [resolvable:$true] %s388_s15 }
   0x9   : > { %p359_p1 = scmp.lt.s32.totalorder %s2842_s29, 3  ;;  %p3326_p2 = scmp.eq.s32.totalorder %s2943_s16, 0 }
   0xa   : > { %s2845_s18 = smov [#allocation7]   ;;  %s2846_s21 = smov [#allocation10]  }
   0xb   : > { %p2948_p3 = pnand %p2091_p0, %p359_p1  ;;  %s417_s19 = sshll.u32 %s2845_s18, 4  ;;  %s2954_s19 = int_to_ptr.vmem [resolvable:$true] %s417_s19 }
   0xc   : > { %s2962_s22 = sshll.u32 %s2846_s21, 4  ;;  %s2593_s24 = scalar_lea.vmem %s389_s15, 64  ;;  %s447_s22 = int_to_ptr.vmem [resolvable:$true] %s2962_s22 }
   0xd   : > { %s3329_s17 = scalar_select %p2948_p3, 1, 0 }
   0xe   : > { %p2450_p4 = pneg %p2948_p3  ;;  %p2594_p7 = scmp.ne.s32.totalorder %s389_s15, %s2593_s24 }
   0xf   : > { %p2601_p10 = scmp.lt.s32.totalorder %s389_s15, %s389_s15  ;;  %p2602_p11 = scmp.lt.s32.totalorder %s2593_s24, %s2593_s24 }
  0x10   : > { %p2958_p5 = pnand %p3326_p2, %p2450_p4 }
  0x11   : > { %p2603_p12 = por %p2602_p11, %p2601_p10 }
  0x12   : > { %p2966_p6 = pneg %p2958_p5 }
  0x14   : > { %p2596_p8 = pnand %p2594_p7, %p2966_p6 }
  0x16   : > { %p2597_p9 = pneg %p2596_p8 }
  0x18   : > { %p2604_p13 = pnand %p2603_p12, %p2597_p9 }
  0x1a   : > { %2607 = shalt.err (!%p2604_p13)
}
  0x1b   : > { %s3322_s25 = smov 16   ;;  %s3324_s26 = smov 1  }
  0x1c   : > { %s3332_s4 = sld [smem:[#allocation21_spill]]  ;;  %s2619_s30 = scalar_lea.vmem %s2954_s19, 512 }
  0x1d   : > { %p2620_p0 = scmp.ne.s32.totalorder %s2954_s19, %s2619_s30  ;;  %p2627_p7 = scmp.lt.s32.totalorder %s2954_s19, %s2954_s19 }
  0x1e   : > { %p2628_p8 = scmp.lt.s32.totalorder %s2619_s30, %s2619_s30 }
  0x1f   : > { %p2622_p1 = pnand %p2620_p0, %p2966_p6 }
  0x20   : > { %p2629_p9 = por %p2628_p8, %p2627_p7 }
  0x21   : > { %p2623_p4 = pneg %p2622_p1 }
  0x22   : > { %2456 = dma.hbm_to_vmem [thread:$0]  (!%p2958_p5), %s3332_s4, 64, %s389_s15, [#allocation5], %s3322_s25, %s3322_s25, %s3324_s26  }
  0x23   : > { %p2630_p10 = pnand %p2629_p9, %p2623_p4 }
  0x25   : > { %2633 = shalt.err (!%p2630_p10)
}
  0x26   : > { %s2849_s18 = smov 64   ;;  %s2850_s21 = smov 4  }
  0x27   : > { %2462 = dma.hbm_to_vmem [thread:$0]  (!%p2958_p5), %s3314_s7, 512, %s2954_s19, [#allocation8], %s2849_s18, %s2849_s18, %s2850_s21  }
  0x28   : > { %s2851_s27 = smov [#allocation13]   ;;  %s2645_s25 = scalar_lea.vmem %s447_s22, 32 }
  0x29   : > { %s472_s28 = sshll.u32 %s2851_s27, 4  ;;  %p2646_p11 = scmp.ne.s32.totalorder %s447_s22, %s2645_s25  ;;  %s473_s28 = int_to_ptr.vmem [resolvable:$true] %s472_s28 }
  0x2a   : > { %p2653_p0 = scmp.lt.s32.totalorder %s447_s22, %s447_s22  ;;  %p2654_p1 = scmp.lt.s32.totalorder %s2645_s25, %s2645_s25 }
  0x2b   : > { %p2648_p12 = pnand %p2646_p11, %p2966_p6 }
  0x2c   : > { %p2655_p4 = por %p2654_p1, %p2653_p0 }
  0x2d   : > { %p2649_p13 = pneg %p2648_p12 }
  0x2f   : > { %p2656_p7 = pnand %p2655_p4, %p2649_p13 }
  0x31   : > { %2659 = shalt.err (!%p2656_p7)
}
  0x32   : > { %s3333_s30 = smov 16   ;;  %s2671_s15 = scalar_lea.vmem %s473_s28, 256 }
  0x33   : > { %2468 = dma.hbm_to_vmem [thread:$0]  (!%p2958_p5), %s3317_s10, 32, %s447_s22, [#allocation11], %s3333_s30, %s3333_s30, %s3324_s26  }
  0x34   : > { %p2672_p8 = scmp.ne.s32.totalorder %s473_s28, %s2671_s15  ;;  %p2679_p11 = scmp.lt.s32.totalorder %s473_s28, %s473_s28 }
  0x35   : > { %p2680_p12 = scmp.lt.s32.totalorder %s2671_s15, %s2671_s15 }
  0x36   : > { %p2674_p9 = pnand %p2672_p8, %p2966_p6 }
  0x37   : > { %p2681_p13 = por %p2680_p12, %p2679_p11 }
  0x38   : > { %p2675_p10 = pneg %p2674_p9 }
  0x3a   : > { %p2682_p0 = pnand %p2681_p13, %p2675_p10 }
  0x3c   : > { %2685 = shalt.err (!%p2682_p0)
}
  0x3d   : > { %2474 = dma.hbm_to_vmem [thread:$0]  (!%p2958_p5), %s3319_s12, 256, %s473_s28, [#allocation14], %s2849_s18, %s2849_s18, %s2850_s21  }
  0x3e   : > { %s2852_s24 = smov [#allocation2]   ;;  %s2853_s19 = smov [#allocation6]  }
  0x3f   : > { %s375_s22 = sshll.u32 %s2852_s24, 4  ;;  %s404_s26 = sshll.u32 %s2853_s19, 4  ;;  %s376_s22 = int_to_ptr.vmem [resolvable:$true] %s375_s22  ;;  %s405_s26 = int_to_ptr.vmem [resolvable:$true] %s404_s26 }
  0x40   : > { %s2697_s4 = scalar_lea.vmem %s376_s22, 16  ;;  %s2704_s15 = scalar_lea.vmem %s376_s22, 32 }
  0x41   : > { %p2698_p1 = scmp.ne.s32.totalorder %s376_s22, %s2697_s4  ;;  %p2705_p8 = scmp.lt.s32.totalorder %s376_s22, %s376_s22 }
  0x42   : > { %p2706_p9 = scmp.lt.s32.totalorder %s2704_s15, %s2697_s4 }
  0x43   : > { %p2700_p4 = pnand %p2698_p1, %p2966_p6 }
  0x44   : > { %p2707_p10 = por %p2706_p9, %p2705_p8 }
  0x45   : > { %p2701_p7 = pneg %p2700_p4 }
  0x47   : > { %p2708_p11 = pnand %p2707_p10, %p2701_p7 }
  0x49   : > { %2711 = shalt.err (!%p2708_p11)
}
  0x4a   : > { %2453 = dma.hbm_to_vmem [thread:$0]  (!%p2958_p5), %s3309_s2, 16, %s376_s22, [#allocation3]  }
  0x4b   : > { %s2723_s21 = scalar_lea.vmem %s405_s26, 32  ;;  %p2731_p1 = scmp.lt.s32.totalorder %s405_s26, %s405_s26 }
  0x4c   : > { %p2724_p12 = scmp.ne.s32.totalorder %s405_s26, %s2723_s21  ;;  %p2732_p4 = scmp.lt.s32.totalorder %s2723_s21, %s2723_s21 }
  0x4e   : > { %p2726_p13 = pnand %p2724_p12, %p2966_p6  ;;  %p2733_p2 = por %p2732_p4, %p2731_p1 }
  0x50   : > { %p2727_p0 = pneg %p2726_p13 }
  0x52   : > { %p2734_p3 = pnand %p2733_p2, %p2727_p0 }
  0x54   : > { %2737 = shalt.err (!%p2734_p3)
}
  0x55   : > { %s3334_s4 = smov 1   ;;  %s2854_s24 = smov [#allocation9]  }
  0x56   : > { %2459 = dma.hbm_to_vmem [thread:$0]  (!%p2958_p5), %s3313_s6, 32, %s405_s26, [#allocation5], %s3333_s30, %s3333_s30, %s3334_s4  }
  0x57   : > { %s430_s22 = sshll.u32 %s2854_s24, 4  ;;  %s2855_s19 = smov [#allocation12]   ;;  %s431_s22 = int_to_ptr.vmem [resolvable:$true] %s430_s22 }
  0x58   : > { %s459_s15 = sshll.u32 %s2855_s19, 4  ;;  %s2749_s25 = scalar_lea.vmem %s431_s22, 32  ;;  %s460_s15 = int_to_ptr.vmem [resolvable:$true] %s459_s15 }
  0x59   : > { %p2750_p7 = scmp.ne.s32.totalorder %s431_s22, %s2749_s25  ;;  %p2757_p8 = scmp.lt.s32.totalorder %s431_s22, %s431_s22 }
  0x5a   : > { %p2758_p9 = scmp.lt.s32.totalorder %s2749_s25, %s2749_s25 }
  0x5b   : > { %p2752_p2 = pnand %p2750_p7, %p2966_p6 }
  0x5c   : > { %p2759_p10 = por %p2758_p9, %p2757_p8 }
  0x5d   : > { %p2753_p3 = pneg %p2752_p2 }
  0x5f   : > { %p2760_p11 = pnand %p2759_p10, %p2753_p3 }
  0x61   : > { %2763 = shalt.err (!%p2760_p11)
}
  0x62   : > { %2465 = dma.hbm_to_vmem [thread:$0]  (!%p2958_p5), %s3315_s8, 32, %s431_s22, [#allocation8], %s3333_s30, %s3333_s30, %s3334_s4  }
  0x63   : > { %s2775_s21 = scalar_lea.vmem %s460_s15, 256  ;;  %p2783_p1 = scmp.lt.s32.totalorder %s460_s15, %s460_s15 }
  0x64   : > { %p2776_p12 = scmp.ne.s32.totalorder %s460_s15, %s2775_s21  ;;  %p2784_p4 = scmp.lt.s32.totalorder %s2775_s21, %s2775_s21 }
  0x66   : > { %p2778_p13 = pnand %p2776_p12, %p2966_p6  ;;  %p2785_p7 = por %p2784_p4, %p2783_p1 }
  0x68   : > { %p2779_p0 = pneg %p2778_p13 }
  0x6a   : > { %p2786_p2 = pnand %p2785_p7, %p2779_p0 }
  0x6c   : > { %2789 = shalt.err (!%p2786_p2)
}
  0x6d   : > { %s2856_s28 = smov 128   ;;  %s2857_s27 = smov 8  }
  0x6e   : > { %2471 = dma.hbm_to_vmem [thread:$0]  (!%p2958_p5), %s3318_s11, 256, %s460_s15, [#allocation11], %s2856_s28, %s2856_s28, %s2857_s27  }
  0x6f   : > { %s2858_s30 = smov [#allocation15]  }
  0x70   : > { %s486_s4 = sshll.u32 %s2858_s30, 4  ;;  %s487_s4 = int_to_ptr.vmem [resolvable:$true] %s486_s4 }
  0x71   : > { %s2801_s22 = scalar_lea.vmem %s487_s4, 16  ;;  %s2808_s25 = scalar_lea.vmem %s487_s4, 32 }
  0x72   : > { %p2802_p3 = scmp.ne.s32.totalorder %s487_s4, %s2801_s22  ;;  %p2809_p10 = scmp.lt.s32.totalorder %s487_s4, %s487_s4 }
  0x73   : > { %p2810_p11 = scmp.lt.s32.totalorder %s2808_s25, %s2801_s22 }
  0x74   : > { %p2804_p8 = pnand %p2802_p3, %p2966_p6 }
  0x75   : > { %p2811_p12 = por %p2810_p11, %p2809_p10 }
  0x76   : > { %p2805_p9 = pneg %p2804_p8 }
  0x78   : > { %p2812_p13 = pnand %p2811_p12, %p2805_p9 }
  0x7a   : > { %2815 = shalt.err (!%p2812_p13)
}
  0x7b   : > { %2477 = dma.hbm_to_vmem [thread:$0]  (!%p2958_p5), %s3320_s13, 16, %s487_s4, [#allocation14]  }
  0x7c   : > { %p3335_p0 = scmp.ne.s32.totalorder %s3329_s17, 0 }
  0x7d   : > { %p3336_p1 = scmp.eq.s32.totalorder (!%p3335_p0), %s2943_s16, 0 }
  0x7e   : > { %506 = sbr.rel (%p3335_p0) target bundleno = 5435 (0x153b), region = 76 }
  0x83   : > { %2821 = dma.done.wait (%p3336_p1), [#allocation3], 16   ;;  %p3337_p6 = pmov %p3336_p1 }
  0x84   : > { %p3338_p4 = pmov %p3336_p1 }
  0x85   : > { %2823 = vsyncadd (%p3337_p6), [#allocation3], 4294967280 }
  0x86   : > { %2825 = dma.done.wait (%p3338_p4), [#allocation5], 96   ;;  %p3339_p7 = pmov %p3336_p1 }
  0x87   : > { %p3340_p2 = pmov %p3336_p1 }
  0x88   : > { %2827 = vsyncadd (%p3339_p7), [#allocation5], 4294967200 }
  0x89   : > { %2829 = dma.done.wait (%p3340_p2), [#allocation8], 544   ;;  %p3341_p5 = pmov %p3336_p1 }
  0x8a   : > { %p3342_p3 = pmov %p3336_p1 }
  0x8b   : > { %2831 = vsyncadd (%p3341_p5), [#allocation8], 4294966752 }
  0x8c   : > { %2833 = dma.done.wait (%p3342_p3), [#allocation11], 288   ;;  %p3343_p8 = pmov %p3336_p1 }
  0x8d   : > { %p3344_p9 = pmov %p3336_p1 }
  0x8e   : > { %2835 = vsyncadd (%p3343_p8), [#allocation11], 4294967008 }
  0x8f   : > { %2837 = dma.done.wait (%p3344_p9), [#allocation14], 272   ;;  %p3345_p10 = pmov %p3336_p1 }
  0x90   : > { %p582_p11 = scmp.lt.s32.totalorder %s2943_s16, 1  ;;  %v2859_v0 = vmov 0.0   ;;  %vm601_vm0 = vcmask 64512   ;;  %v628_v8 = vld [vmem:[%s3308_s1] sm:$0xf]  ;;  %vm640_vm1 = vcmask 1043456   ;;  %v592_v14 = vlaneseq }
  0x91   : > { %2839 = vsyncadd (%p3345_p10), [#allocation14], 4294967024  ;;  %2272 = vmatprep.subr.bf16.mxu0 %v2859_v0  ;;  %2278 = vmatprep.subr.bf16.mxu1 %v2859_v0  ;;  %v642_v9 = vsel %vm640_vm1, %v628_v8, 0  ;;  %vm2860_vm2 = vmmov 0   ;;  %v2523_v10 = vld [vmem:[%s3310_s3 + $0x8] sm:$0xff]   ;;  %v2522_v29 = vld [vmem:[%s3310_s3 + $0x18] sm:$0xff]  }
  0x92   : > { %s3347_s16 = smov (!%p582_p11, %s2943_s16), 1  ;;  %2274 = vmatprep.mubr.msk.bf16.mxu0 %vm2860_vm2, %v2859_v0  ;;  %2282 = vmatprep.mubr.msk.bf16.mxu1 %vm2860_vm2, %v2859_v0  ;;  %v593_v15 = vshrl.u32 %v592_v14, 7  ;;  %v2524_v31 = vld [vmem:[%s3310_s3 + $0x10] sm:$0xff]   ;;  %v2525_v32 = vld [vmem:[%s3310_s3] sm:$0xff]   ;;  %vm708_vm6 = vcmask 261120   ;;  %v598_v55 = vand.u32 127, %v592_v14 }
  0x93   : > { %s2112_s17 = sshll.u32 %s3347_s16, 3  ;;  %2273 = vmatpush3.bf16.msra.mxu0 %v642_v9  ;;  %2279 = vmatpush3.bf16.msra.mxu1 %v2523_v10  ;;  %v2115_v33 = vld [vmem:[#allocation2] ss:$0 sm:$0xff]  ;;  %v2117_v42 = vld [vmem:[#allocation4] ss:$0 sm:$0xff]  ;;  %vm1196_vm8 = vcmask 523264  }
  0x94   : > { %s585_s15 = scalar_lea.vmem %s3307_s0, %s2112_s17  ;;  %2286 = vmatprep.subr.bf16.mxu0 %v2859_v0  ;;  %2280 = vmatprep.subr.bf16.mxu1 %v2859_v0  ;;  %vm594_vm3 = vcmp.lt.s32.totalorder %v593_v15, 4  ;;  %v2125_v43 = vld [vmem:[#allocation4 + $0x1] ss:$0 sm:$0xff]  ;;  %vm599_vm7 = vcmp.lt.s32.totalorder %v598_v55, 7  ;;  %v2861_v56 = vmov -1e+30   ;;  %s589_s18 = scalar_lea.vmem %s3321_s14, %s2112_s17 }
  0x95   : > { %v591_v1 = vld [vmem:[%s585_s15] sm:$0xff]  ;;  %v2114_v18 = vsel %vm594_vm3, 1.0, %v2859_v0  ;;  %v3141_v57 = vsel %vm599_vm7, 0.0, %v2861_v56 }
  0x96   : > { %v602_v2 = vsel %vm601_vm0, %v591_v1, 0.0  ;;  %v623_v20 = vsub.f32 1.0, %v2114_v18 }
  0x97   : > { %603 = vadd.xlane.f32.xlu0 %v602_v2  ;;  %2281 = vmatpush3.bf16.msra.mxu1 %v2525_v32  ;;  %v2134_v32 = vld [vmem:[#allocation6] ss:$0 sm:$0xff] }
  0x98   : > { %2294 = vmatprep.subr.bf16.mxu1 %v2859_v0 }
 0x120   : > { %v604_v3 = vpop.xlane.xlu0 %603 }
 0x121   : > { %v606_v4 = vmul.f32 0.125, %v604_v3 }
 0x123   : > { %v607_v5 = vsub.f32 %v591_v1, %v606_v4  ;;  %v3105_v25 = vmul.f32 %v2114_v18, %v606_v4 }
 0x125   : > { %v608_v6 = vmul.f32 %v607_v5, %v607_v5  ;;  %v625_v26 = vsub.f32 %v591_v1, %v3105_v25 }
 0x127   : > { %v609_v7 = vsel %vm601_vm0, %v608_v6, 0.0 }
 0x128   : > { %610 = vadd.xlane.f32.xlu0 %v609_v7 }
 0x1b1   : > { %v611_v11 = vpop.xlane.xlu0 %610 }
 0x1b2   : > { %v612_v12 = vmul.f32 0.125, %v611_v11 }
 0x1b4   : > { %v613_v13 = vadd.f32 1e-05, %v612_v12 }
 0x1b6   : > { %2552 = vrsqrt.f32 %v613_v13  ;;  %vm616_vm4 = vcmp.eq.f32.partialorder %v613_v13, inf  ;;  %v619_v19 = vand.u32 2147483648, %v613_v13  ;;  %vm618_vm5 = vcmp.eq.f32.partialorder %v613_v13, 0.0 }
 0x1c3   : > { %v2553_v16 = vpop.eup %2552 }
 0x1c4   : > { %v615_v17 = vmul.f32 %v2553_v16, %v613_v13 }
 0x1c6   : > { %v617_v21 = vsel %vm616_vm4, %v613_v13, %v615_v17  ;;  %v2526_v13 = vld [vmem:[%s3312_s5 + $0x8] sm:$0xff]  }
 0x1c7   : > { %v620_v22 = vsel %vm618_vm5, %v619_v19, %v617_v21 }
 0x1c8   : > { %v622_v23 = vmul.f32 %v2114_v18, %v620_v22  ;;  %v2528_v22 = vld [vmem:[%s3312_s5] sm:$0xff]  }
 0x1ca   : > { %v3102_v24 = vadd.f32 %v623_v20, %v622_v23  ;;  %v2527_v20 = vld [vmem:[%s3312_s5 + $0x18] sm:$0xff]   ;;  %v2529_v23 = vld [vmem:[%s3312_s5 + $0x10] sm:$0xff]  }
 0x1cc   : > { %2554 = vrcp.f32 %v3102_v24 }
 0x1d9   : > { %v2555_v27 = vpop.eup %2554 }
 0x1da   : > { %v627_v28 = vmul.f32 %v2555_v27, %v625_v26 }
 0x1dc   : > { %v629_v30 = vpack.c.bf16 %v627_v28, %v627_v28 }
 0x1de   : > { %2275 = vmatmul.mubr.msk.bf16.vlgmr.msra.gmra.mxu0 %vm601_vm0, %v629_v30 }
 0x1df   : > { %2287 = vmatpush3.bf16.msra.mxu0 %v2522_v29  ;;  %2290 = vmatprep.mubr.msk.bf16.mxu0 %vm2860_vm2, %v2859_v0 }
 0x1e0   : > { %2288 = vmatprep.subr.bf16.mxu0 %v2859_v0 }
 0x1e3   : > { %2289 = vmatpush3.bf16.msra.mxu0 %v2524_v31 }
 0x1e4   : > { %2300 = vmatprep.subr.bf16.mxu0 %v2859_v0 }
 0x29e   : > { %v678_v34 = vpop.f32.mrf.mxu0 }
 0x29f   : > { %v3123_v35 = vadd.f32 %v2115_v33, %v678_v34 }
 0x2a0   : > { %v2276_v36 = vpop.f32.mrf.mxu0 }
 0x2a1   : > { %v684_v37 = vpack.c.bf16 %v3123_v35, %v3123_v35 }
 0x2a2   : > { %v681_v38 = vpop.f32.mrf.mxu0 }
 0x2a3   : > { %2283 = vmatmul.mubr.msk.bf16.vlgmr.msra.gmra.mxu1 %vm708_vm6, %v684_v37  ;;  %2291 = vmatmul.mubr.msk.bf16.vlgmr.msra.gmra.mxu0 %vm708_vm6, %v684_v37  ;;  %v710_v39 = vsel %vm708_vm6, %v684_v37, 0  ;;  %v888_v40 = vsel %vm640_vm1, %v684_v37, 0 }
 0x2a4   : > { %v2277_v41 = vpop.f32.mrf.mxu0  ;;  %2295 = vmatpush3.bf16.xpose.msra.mxu1 %v710_v39  ;;  %2301 = vmatpush3.bf16.msra.mxu0 %v888_v40 }
 0x2a5   : > { %2296 = vmatprep.mubr.msk.bf16.mxu1 %vm2860_vm2, %v2859_v0  ;;  %2302 = vmatprep.mubr.msk.bf16.mxu0 %vm2860_vm2, %v2859_v0 }
 0x2a6   : > { %2306 = vmatprep.subr.bf16.mxu1 %v2859_v0  ;;  %2314 = vmatprep.subr.bf16.mxu0 %v2859_v0 }
 0x363   : > { %v746_v44 = vpop.f32.mrf.mxu1  ;;  %v811_v45 = vpop.f32.mrf.mxu0 }
 0x364   : > { %v747_v46 = vadd.f32 %v2117_v42, %v746_v44  ;;  %v812_v47 = vadd.f32 %v2125_v43, %v811_v45 }
 0x365   : > { %v2284_v48 = vpop.f32.mrf.mxu1  ;;  %v2292_v49 = vpop.f32.mrf.mxu0 }
 0x366   : > { %v817_v50 = vpack.c.bf16 %v812_v47, %v747_v46 }
 0x367   : > { %v749_v51 = vpop.f32.mrf.mxu1  ;;  %v814_v52 = vpop.f32.mrf.mxu0 }
 0x368   : > { %2297 = vmatmul.mubr.msk.bf16.vlgmr.msra.gmra.mxu1 %vm708_vm6, %v817_v50  ;;  %v2530_v51 = vld [vmem:[#allocation7 + $0x8] sm:$0xff]   ;;  %v2531_v52 = vld [vmem:[#allocation7] sm:$0xff]  }
 0x369   : > { %v2285_v53 = vpop.f32.mrf.mxu1  ;;  %v2293_v54 = vpop.f32.mrf.mxu0  ;;  %2310 = vmatprep.mubr.msk.bf16.mxu1 %vm2860_vm2, %v2859_v0  ;;  %2307 = vmatpush3.bf16.msra.mxu1 %v2526_v13 }
 0x36a   : > { %2308 = vmatprep.subr.bf16.mxu1 %v2859_v0  ;;  %v2533_v53 = vld [vmem:[%s3316_s9 + $0x10] sm:$0xff]  }
 0x36d   : > { %2309 = vmatpush3.bf16.msra.mxu1 %v2528_v22 }
 0x36e   : > { %2322 = vmatprep.subr.bf16.mxu1 %v2859_v0 }
 0x428   : > { %v855_v58 = vpop.f32.mrf.mxu1 }
 0x429   : > { %v856_v59 = vadd.f32 %v855_v58, %v3141_v57 }
 0x42a   : > { %v2298_v60 = vpop.f32.mrf.mxu1 }
 0x42b   : > { %v862_v61 = vsel %vm601_vm0, %v856_v59, -inf }
 0x42c   : > { %863 = vmax.xlane.f32.xlu1 %v862_v61  ;;  %v858_v62 = vpop.f32.mrf.mxu1  ;;  %v2143_v61 = vld [vmem:[#allocation12 + $0x1] ss:$0 sm:$0xff] }
 0x42d   : > { %v859_v63 = vadd.f32 %v858_v62, %v3141_v57 }
 0x42e   : > { %v2299_v1 = vpop.f32.mrf.mxu1 }
 0x42f   : > { %v865_v2 = vsel %vm601_vm0, %v859_v63, -inf }
 0x430   : > { %866 = vmax.xlane.f32.xlu1 %v865_v2  ;;  %v2534_v2 = vld [vmem:[%s3316_s9 + $0x8] sm:$0xff]  }
 0x4b5   : > { %v864_v3 = vpop.xlane.xlu1 %863 }
 0x4b6   : > { %v868_v4 = vsub.f32 %v856_v59, %v864_v3  ;;  %v2142_v59 = vld [vmem:[#allocation12] ss:$0 sm:$0xff]  ;;  %v2535_v3 = vld [vmem:[%s3316_s9] sm:$0xff]  }
 0x4b8   : > { %v870_v5 = vmul.f32 1.442695, %v868_v4  ;;  %v2144_v4 = vld [vmem:[#allocation9] ss:$0 sm:$0xff] }
 0x4b9   : > { %v867_v6 = vpop.xlane.xlu1 %866 }
 0x4ba   : > { %2556 = vpow2.f32 %v870_v5  ;;  %v869_v7 = vsub.f32 %v859_v63, %v867_v6 }
 0x4bc   : > { %v872_v8 = vmul.f32 1.442695, %v869_v7 }
 0x4be   : > { %2558 = vpow2.f32 %v872_v8 }
 0x4c7   : > { %v2557_v9 = vpop.eup %2556 }
 0x4c8   : > { %v874_v10 = vsel %vm601_vm0, %v2557_v9, 0.0 }
 0x4c9   : > { %875 = vadd.xlane.f32.xlu0 %v874_v10 }
 0x4cb   : > { %v2559_v11 = vpop.eup %2558 }
 0x4cc   : > { %v877_v12 = vsel %vm601_vm0, %v2559_v11, 0.0 }
 0x4cd   : > { %878 = vadd.xlane.f32.xlu1 %v877_v12  ;;  %v2148_v12 = vld [vmem:[#allocation10] ss:$0 sm:$0xff] }
 0x552   : > { %v876_v14 = vpop.xlane.xlu0 %875 }
 0x553   : > { %2560 = vrcp.f32 %v876_v14 }
 0x556   : > { %v879_v15 = vpop.xlane.xlu1 %878 }
 0x557   : > { %2562 = vrcp.f32 %v879_v15 }
 0x560   : > { %v2561_v16 = vpop.eup %2560 }
 0x561   : > { %v882_v18 = vmul.f32 %v2561_v16, %v2557_v9 }
 0x564   : > { %v2563_v17 = vpop.eup %2562 }
 0x565   : > { %v883_v19 = vmul.f32 %v2563_v17, %v2559_v11 }
 0x567   : > { %v884_v21 = vpack.c.bf16 %v883_v19, %v882_v18 }
 0x569   : > { %2303 = vmatmul.mubr.msk.bf16.vlgmr.msra.gmra.mxu0 %vm601_vm0, %v884_v21 }
 0x56a   : > { %2315 = vmatpush3.bf16.msra.mxu0 %v2527_v20  ;;  %2318 = vmatprep.mubr.msk.bf16.mxu0 %vm2860_vm2, %v2859_v0 }
 0x56b   : > { %2316 = vmatprep.subr.bf16.mxu0 %v2859_v0 }
 0x56e   : > { %2317 = vmatpush3.bf16.msra.mxu0 %v2529_v23 }
 0x56f   : > { %2330 = vmatprep.subr.bf16.mxu0 %v2859_v0 }
 0x629   : > { %v924_v26 = vpop.f32.mrf.mxu0 }
 0x62a   : > { %v936_v27 = vpack.c.bf16 %v924_v26, %v924_v26 }
 0x62b   : > { %v2304_v28 = vpop.f32.mrf.mxu0 }
 0x62c   : > { %2311 = vmatmul.mubr.msk.bf16.vlgmr.msra.gmra.mxu1 %vm708_vm6, %v936_v27  ;;  %v2536_v27 = vld [vmem:[%s3310_s3 + $0x28] sm:$0xff]   ;;  %v2537_v28 = vld [vmem:[%s3310_s3 + $0x20] sm:$0xff]  }
 0x62d   : > { %v927_v29 = vpop.f32.mrf.mxu0  ;;  %2326 = vmatprep.mubr.msk.bf16.mxu1 %vm2860_vm2, %v2859_v0  ;;  %2323 = vmatpush3.bf16.msra.mxu1 %v2530_v51 }
 0x62e   : > { %v1004_v30 = vpack.c.bf16 %v927_v29, %v927_v29  ;;  %2324 = vmatprep.subr.bf16.mxu1 %v2859_v0 }
 0x62f   : > { %v2305_v31 = vpop.f32.mrf.mxu0 }
 0x630   : > { %2319 = vmatmul.mubr.msk.bf16.vlgmr.msra.gmra.mxu0 %vm708_vm6, %v1004_v30 }
 0x631   : > { %2338 = vmatprep.mubr.msk.bf16.mxu0 %vm2860_vm2, %v2859_v0  ;;  %2325 = vmatpush3.bf16.msra.mxu1 %v2531_v52 }
 0x632   : > { %2342 = vmatprep.subr.bf16.mxu1 %v2859_v0 }
 0x6ec   : > { %v986_v33 = vpop.f32.mrf.mxu1 }
 0x6ed   : > { %v998_v36 = vadd.f32 %v2134_v32, %v986_v33  ;;  %v2154_v33 = vld [vmem:[#allocation12 + $0x2] ss:$0 sm:$0xff] }
 0x6ee   : > { %v2312_v34 = vpop.f32.mrf.mxu1 }
 0x6f0   : > { %v989_v37 = vpop.f32.mrf.mxu1  ;;  %v1054_v38 = vpop.f32.mrf.mxu0 }
 0x6f1   : > { %v1060_v39 = vadd.f32 %v1054_v38, %v998_v36  ;;  %v2155_v36 = vld [vmem:[#allocation12 + $0x3] ss:$0 sm:$0xff] }
 0x6f2   : > { %v2313_v40 = vpop.f32.mrf.mxu1  ;;  %v2320_v41 = vpop.f32.mrf.mxu0 }
 0x6f3   : > { %v1061_v42 = vadd.f32 %v1060_v39, %v3123_v35  ;;  %v2532_v35 = vld [vmem:[%s3316_s9 + $0x18] sm:$0xff]  }
 0x6f4   : > { %v1057_v43 = vpop.f32.mrf.mxu0  ;;  %2331 = vmatpush3.bf16.msra.mxu0 %v2532_v35  ;;  %v2538_v39 = vld [vmem:[%s3310_s3 + $0x38] sm:$0xff]  }
 0x6f5   : > { %v1064_v44 = vsel %vm708_vm6, %v1061_v42, 0.0  ;;  %2332 = vmatprep.subr.bf16.mxu0 %v2859_v0 }
 0x6f6   : > { %1065 = vadd.xlane.f32.xlu0 %v1064_v44  ;;  %v2321_v45 = vpop.f32.mrf.mxu0 }
 0x6f8   : > { %2333 = vmatpush3.bf16.msra.mxu0 %v2533_v53 }
 0x6f9   : > { %2334 = vmatprep.subr.bf16.mxu0 %v2859_v0 }
 0x6fc   : > { %2335 = vmatpush3.bf16.msra.mxu0 %v2534_v2 }
 0x6fd   : > { %2336 = vmatprep.subr.bf16.mxu0 %v2859_v0 }
 0x700   : > { %2337 = vmatpush3.bf16.msra.mxu0 %v2535_v3 }
 0x701   : > { %2358 = vmatprep.subr.bf16.mxu0 %v2859_v0 }
 0x77f   : > { %v1066_v46 = vpop.xlane.xlu0 %1065 }
 0x780   : > { %v1068_v47 = vmul.f32 0.03125, %v1066_v46 }
 0x782   : > { %v1069_v48 = vsub.f32 %v1061_v42, %v1068_v47  ;;  %v2539_v42 = vld [vmem:[%s3310_s3 + $0x30] sm:$0xff]   ;;  %v2160_v47 = vld [vmem:[#allocation4 + $0x2] ss:$0 sm:$0xff] }
 0x784   : > { %v1070_v49 = vmul.f32 %v1069_v48, %v1069_v48 }
 0x786   : > { %v1071_v50 = vsel %vm708_vm6, %v1070_v49, 0.0  ;;  %v2168_v49 = vld [vmem:[#allocation4 + $0x3] ss:$0 sm:$0xff] }
 0x787   : > { %1072 = vadd.xlane.f32.xlu1 %v1071_v50 }
 0x810   : > { %v1073_v54 = vpop.xlane.xlu1 %1072 }
 0x811   : > { %v1074_v55 = vmul.f32 0.03125, %v1073_v54 }
 0x813   : > { %v1075_v56 = vadd.f32 1e-05, %v1074_v55 }
 0x815   : > { %2564 = vrsqrt.f32 %v1075_v56 }
 0x822   : > { %v2565_v58 = vpop.eup %2564 }
 0x823   : > { %v1077_v60 = vmul.f32 %v2565_v58, %v1069_v48 }
 0x825   : > { %v1082_v62 = vmul.f32 %v2142_v59, %v1077_v60 }
 0x827   : > { %v1087_v63 = vadd.f32 %v2143_v61, %v1082_v62 }
 0x829   : > { %v1092_v1 = vpack.c.bf16 %v1087_v63, %v1087_v63 }
 0x82b   : > { %2327 = vmatmul.mubr.msk.bf16.vlgmr.msra.gmra.mxu1 %vm708_vm6, %v1092_v1 }
 0x82c   : > { %2346 = vmatprep.mubr.msk.bf16.mxu1 %vm2860_vm2, %v2859_v0  ;;  %2343 = vmatpush3.bf16.msra.mxu1 %v2536_v27 }
 0x82d   : > { %2344 = vmatprep.subr.bf16.mxu1 %v2859_v0 }
 0x830   : > { %2345 = vmatpush3.bf16.msra.mxu1 %v2537_v28 }
 0x831   : > { %2350 = vmatprep.subr.bf16.mxu1 %v2859_v0 }
 0x8eb   : > { %v1149_v5 = vpop.f32.mrf.mxu1 }
 0x8ec   : > { %v1150_v6 = vadd.f32 %v2144_v4, %v1149_v5 }
 0x8ed   : > { %v2328_v7 = vpop.f32.mrf.mxu1 }
 0x8ee   : > { %v1155_v8 = vmax.f32 %v1150_v6, 0.0 }
 0x8ef   : > { %v1152_v9 = vpop.f32.mrf.mxu1 }
 0x8f0   : > { %v1164_v10 = vpack.c.bf16 %v1155_v8, %v1155_v8 }
 0x8f1   : > { %v2329_v11 = vpop.f32.mrf.mxu1 }
 0x8f2   : > { %2339 = vmatmul.mubr.msk.bf16.vlgmr.msra.gmra.mxu0 %vm1196_vm8, %v1164_v10 }
 0x8f3   : > { %2360 = vmatprep.mubr.msk.bf16.mxu0 %vm2860_vm2, %v2859_v0 }
 0x9b2   : > { %v1234_v13 = vpop.f32.mrf.mxu0 }
 0x9b3   : > { %v1235_v14 = vadd.f32 %v2148_v12, %v1234_v13 }
 0x9b4   : > { %v2340_v15 = vpop.f32.mrf.mxu0 }
 0x9b5   : > { %v1240_v16 = vadd.f32 %v1235_v14, %v1087_v63 }
 0x9b6   : > { %v1237_v17 = vpop.f32.mrf.mxu0 }
 0x9b7   : > { %v1243_v18 = vsel %vm708_vm6, %v1240_v16, 0.0 }
 0x9b8   : > { %1244 = vadd.xlane.f32.xlu0 %v1243_v18  ;;  %v2341_v19 = vpop.f32.mrf.mxu0  ;;  %v2541_v18 = vld [vmem:[%s3312_s5 + $0x38] sm:$0xff]  }
 0xa41   : > { %v1245_v20 = vpop.xlane.xlu0 %1244 }
 0xa42   : > { %v1246_v21 = vmul.f32 0.03125, %v1245_v20  ;;  %v2542_v20 = vld [vmem:[%s3312_s5 + $0x20] sm:$0xff]  }
 0xa44   : > { %v1247_v22 = vsub.f32 %v1240_v16, %v1246_v21  ;;  %v2543_v21 = vld [vmem:[%s3312_s5 + $0x30] sm:$0xff]  }
 0xa46   : > { %v1248_v23 = vmul.f32 %v1247_v22, %v1247_v22 }
 0xa48   : > { %v1249_v26 = vsel %vm708_vm6, %v1248_v23, 0.0 }
 0xa49   : > { %1250 = vadd.xlane.f32.xlu1 %v1249_v26 }
 0xad2   : > { %v1251_v29 = vpop.xlane.xlu1 %1250 }
 0xad3   : > { %v1252_v30 = vmul.f32 0.03125, %v1251_v29 }
 0xad5   : > { %v1253_v31 = vadd.f32 1e-05, %v1252_v30  ;;  %v2181_v30 = vld [vmem:[#allocation6 + $0x1] ss:$0 sm:$0xff] }
 0xad7   : > { %2566 = vrsqrt.f32 %v1253_v31 }
 0xae4   : > { %v2567_v32 = vpop.eup %2566 }
 0xae5   : > { %v1255_v34 = vmul.f32 %v2567_v32, %v1247_v22 }
 0xae7   : > { %v1260_v37 = vmul.f32 %v2154_v33, %v1255_v34 }
 0xae9   : > { %v3211_v38 = vadd.f32 %v2155_v36, %v1260_v37 }
 0xaeb   : > { %v1266_v40 = vpack.c.bf16 %v3211_v38, %v3211_v38 }
 0xaed   : > { %2347 = vmatmul.mubr.msk.bf16.vlgmr.msra.gmra.mxu1 %vm708_vm6, %v1266_v40  ;;  %v1293_v41 = vsel %vm708_vm6, %v1266_v40, 0  ;;  %v1471_v43 = vsel %vm640_vm1, %v1266_v40, 0 }
 0xaee   : > { %2351 = vmatpush3.bf16.msra.mxu1 %v2538_v39  ;;  %2359 = vmatpush3.bf16.xpose.msra.mxu0 %v1293_v41 }
 0xaef   : > { %2352 = vmatprep.subr.bf16.mxu1 %v2859_v0  ;;  %2354 = vmatprep.mubr.msk.bf16.mxu1 %vm2860_vm2, %v2859_v0 }
 0xaf0   : > { %2370 = vmatprep.subr.bf16.mxu0 %v2859_v0 }
 0xaf2   : > { %2353 = vmatpush3.bf16.msra.mxu1 %v2539_v42 }
 0xaf3   : > { %2364 = vmatprep.subr.bf16.mxu1 %v2859_v0 }
 0xaf5   : > { %2355 = vmatmul.mubr.msk.bf16.vlgmr.msra.gmra.mxu1 %vm708_vm6, %v1266_v40 }
 0xaf6   : > { %2365 = vmatpush3.bf16.msra.mxu1 %v1471_v43  ;;  %2366 = vmatprep.mubr.msk.bf16.mxu1 %vm2860_vm2, %v2859_v0 }
 0xaf7   : > { %2378 = vmatprep.subr.bf16.mxu1 %v2859_v0 }
 0xbad   : > { %v1329_v44 = vpop.f32.mrf.mxu1 }
 0xbae   : > { %v1330_v51 = vadd.f32 %v2160_v47, %v1329_v44 }
 0xbaf   : > { %v2348_v45 = vpop.f32.mrf.mxu1 }
 0xbb1   : > { %v1332_v46 = vpop.f32.mrf.mxu1 }
 0xbb3   : > { %v2349_v48 = vpop.f32.mrf.mxu1 }
 0xbb5   : > { %v1394_v50 = vpop.f32.mrf.mxu1 }
 0xbb6   : > { %v1395_v52 = vadd.f32 %v2168_v49, %v1394_v50  ;;  %v2544_v50 = vld [vmem:[#allocation7 + $0x18] sm:$0xff]  }
 0xbb7   : > { %v2356_v35 = vpop.f32.mrf.mxu1 }
 0xbb8   : > { %v1400_v53 = vpack.c.bf16 %v1395_v52, %v1330_v51  ;;  %v2545_v51 = vld [vmem:[#allocation7 + $0x10] sm:$0xff]   ;;  %v2547_v52 = vld [vmem:[%s3316_s9 + $0x30] sm:$0xff]  }
 0xbb9   : > { %v1397_v54 = vpop.f32.mrf.mxu1 }
 0xbba   : > { %2361 = vmatmul.mubr.msk.bf16.vlgmr.msra.gmra.mxu0 %vm708_vm6, %v1400_v53 }
 0xbbb   : > { %v2357_v55 = vpop.f32.mrf.mxu1  ;;  %2374 = vmatprep.mubr.msk.bf16.mxu0 %vm2860_vm2, %v2859_v0 }
 0xc7a   : > { %v1438_v56 = vpop.f32.mrf.mxu0 }
 0xc7b   : > { %v1439_v58 = vadd.f32 %v1438_v56, %v3141_v57  ;;  %v2189_v56 = vld [vmem:[#allocation12 + $0x4] ss:$0 sm:$0xff] }
 0xc7c   : > { %v2362_v59 = vpop.f32.mrf.mxu0 }
 0xc7d   : > { %v1445_v60 = vsel %vm601_vm0, %v1439_v58, -inf  ;;  %v2190_v59 = vld [vmem:[#allocation12 + $0x5] ss:$0 sm:$0xff] }
 0xc7e   : > { %1446 = vmax.xlane.f32.xlu0 %v1445_v60  ;;  %v1441_v61 = vpop.f32.mrf.mxu0 }
 0xc7f   : > { %v1442_v62 = vadd.f32 %v1441_v61, %v3141_v57  ;;  %v2540_v57 = vld [vmem:[%s3312_s5 + $0x28] sm:$0xff]  }
 0xc80   : > { %v2363_v63 = vpop.f32.mrf.mxu0  ;;  %2371 = vmatpush3.bf16.msra.mxu0 %v2540_v57 }
 0xc81   : > { %v1448_v1 = vsel %vm601_vm0, %v1442_v62, -inf  ;;  %2372 = vmatprep.subr.bf16.mxu0 %v2859_v0  ;;  %v2548_v63 = vld [vmem:[%s3316_s9 + $0x28] sm:$0xff]  }
 0xc82   : > { %1449 = vmax.xlane.f32.xlu1 %v1448_v1  ;;  %v2549_v1 = vld [vmem:[%s3316_s9 + $0x20] sm:$0xff]  }
 0xc84   : > { %2373 = vmatpush3.bf16.msra.mxu0 %v2542_v20 }
 0xc85   : > { %2386 = vmatprep.subr.bf16.mxu0 %v2859_v0 }
 0xd07   : > { %v1447_v2 = vpop.xlane.xlu0 %1446 }
 0xd08   : > { %v1451_v3 = vsub.f32 %v1439_v58, %v1447_v2  ;;  %v2191_v2 = vld [vmem:[#allocation9 + $0x1] ss:$0 sm:$0xff] }
 0xd0a   : > { %v1453_v4 = vmul.f32 1.442695, %v1451_v3 }
 0xd0b   : > { %v1450_v5 = vpop.xlane.xlu1 %1449 }
 0xd0c   : > { %2568 = vpow2.f32 %v1453_v4  ;;  %v1452_v6 = vsub.f32 %v1442_v62, %v1450_v5 }
 0xd0e   : > { %v1455_v7 = vmul.f32 1.442695, %v1452_v6 }
 0xd10   : > { %2570 = vpow2.f32 %v1455_v7 }
 0xd19   : > { %v2569_v8 = vpop.eup %2568 }
 0xd1a   : > { %v1457_v9 = vsel %vm601_vm0, %v2569_v8, 0.0 }
 0xd1b   : > { %1458 = vadd.xlane.f32.xlu0 %v1457_v9 }
 0xd1d   : > { %v2571_v10 = vpop.eup %2570 }
 0xd1e   : > { %v1460_v11 = vsel %vm601_vm0, %v2571_v10, 0.0 }
 0xd1f   : > { %1461 = vadd.xlane.f32.xlu1 %v1460_v11 }
 0xda4   : > { %v1459_v12 = vpop.xlane.xlu0 %1458 }
 0xda5   : > { %2572 = vrcp.f32 %v1459_v12 }
 0xda8   : > { %v1462_v13 = vpop.xlane.xlu1 %1461 }
 0xda9   : > { %2574 = vrcp.f32 %v1462_v13 }
 0xdb2   : > { %v2573_v14 = vpop.eup %2572 }
 0xdb3   : > { %v1465_v16 = vmul.f32 %v2573_v14, %v2569_v8 }
 0xdb6   : > { %v2575_v15 = vpop.eup %2574 }
 0xdb7   : > { %v1466_v17 = vmul.f32 %v2575_v15, %v2571_v10  ;;  %v2203_v10 = vld [vmem:[#allocation10 + $0x1] ss:$0 sm:$0xff] }
 0xdb9   : > { %v1467_v19 = vpack.c.bf16 %v1466_v17, %v1465_v16 }
 0xdbb   : > { %2367 = vmatmul.mubr.msk.bf16.vlgmr.msra.gmra.mxu1 %vm601_vm0, %v1467_v19 }
 0xdbc   : > { %2379 = vmatpush3.bf16.msra.mxu1 %v2541_v18  ;;  %2382 = vmatprep.mubr.msk.bf16.mxu1 %vm2860_vm2, %v2859_v0 }
 0xdbd   : > { %2380 = vmatprep.subr.bf16.mxu1 %v2859_v0 }
 0xdc0   : > { %2381 = vmatpush3.bf16.msra.mxu1 %v2543_v21 }
 0xdc1   : > { %2394 = vmatprep.subr.bf16.mxu1 %v2859_v0 }
 0xe7b   : > { %v1507_v22 = vpop.f32.mrf.mxu1 }
 0xe7c   : > { %v1521_v23 = vpack.c.bf16 %v1507_v22, %v1507_v22 }
 0xe7d   : > { %v2368_v26 = vpop.f32.mrf.mxu1 }
 0xe7e   : > { %2375 = vmatmul.mubr.msk.bf16.vlgmr.msra.gmra.mxu0 %vm708_vm6, %v1521_v23 }
 0xe7f   : > { %v1510_v27 = vpop.f32.mrf.mxu1  ;;  %2390 = vmatprep.mubr.msk.bf16.mxu0 %vm2860_vm2, %v2859_v0  ;;  %2387 = vmatpush3.bf16.msra.mxu0 %v2544_v50 }
 0xe80   : > { %v1589_v28 = vpack.c.bf16 %v1510_v27, %v1510_v27  ;;  %2388 = vmatprep.subr.bf16.mxu0 %v2859_v0 }
 0xe81   : > { %v2369_v29 = vpop.f32.mrf.mxu1 }
 0xe82   : > { %2383 = vmatmul.mubr.msk.bf16.vlgmr.msra.gmra.mxu1 %vm708_vm6, %v1589_v28  ;;  %v2209_v28 = vld [vmem:[#allocation12 + $0x6] ss:$0 sm:$0xff] }
 0xe83   : > { %2402 = vmatprep.mubr.msk.bf16.mxu1 %vm2860_vm2, %v2859_v0  ;;  %2389 = vmatpush3.bf16.msra.mxu0 %v2545_v51 }
 0xe84   : > { %2406 = vmatprep.subr.bf16.mxu0 %v2859_v0 }
 0xf3e   : > { %v1571_v31 = vpop.f32.mrf.mxu0 }
 0xf3f   : > { %v1583_v33 = vadd.f32 %v2181_v30, %v1571_v31  ;;  %v2210_v30 = vld [vmem:[#allocation12 + $0x7] ss:$0 sm:$0xff] }
 0xf40   : > { %v2376_v32 = vpop.f32.mrf.mxu0 }
 0xf42   : > { %v1574_v34 = vpop.f32.mrf.mxu0  ;;  %v1639_v36 = vpop.f32.mrf.mxu1 }
 0xf43   : > { %v1645_v37 = vadd.f32 %v1639_v36, %v1583_v33 }
 0xf44   : > { %v2377_v39 = vpop.f32.mrf.mxu0  ;;  %v2384_v40 = vpop.f32.mrf.mxu1 }
 0xf45   : > { %v1646_v41 = vadd.f32 %v1645_v37, %v3211_v38  ;;  %v2546_v38 = vld [vmem:[%s3316_s9 + $0x38] sm:$0xff]  }
 0xf46   : > { %v1642_v42 = vpop.f32.mrf.mxu1  ;;  %2395 = vmatpush3.bf16.msra.mxu1 %v2546_v38 }
 0xf47   : > { %v1649_v43 = vsel %vm708_vm6, %v1646_v41, 0.0  ;;  %2396 = vmatprep.subr.bf16.mxu1 %v2859_v0  ;;  %v2551_v42 = vld [vmem:[#allocation13] sm:$0xff]  }
 0xf48   : > { %v2385_v44 = vpop.f32.mrf.mxu1  ;;  %1650 = vadd.xlane.f32.xlu0 %v1649_v43 }
 0xf4a   : > { %2397 = vmatpush3.bf16.msra.mxu1 %v2547_v52  ;;  %v2213_v52 = vld [vmem:[#allocation15] ss:$0 sm:$0xff] }
 0xf4b   : > { %2398 = vmatprep.subr.bf16.mxu1 %v2859_v0 }
 0xf4e   : > { %2399 = vmatpush3.bf16.msra.mxu1 %v2548_v63 }
 0xf4f   : > { %2400 = vmatprep.subr.bf16.mxu1 %v2859_v0 }
 0xf52   : > { %2401 = vmatpush3.bf16.msra.mxu1 %v2549_v1 }
 0xfd1   : > { %v1651_v45 = vpop.xlane.xlu0 %1650 }
 0xfd2   : > { %v1652_v46 = vmul.f32 0.03125, %v1651_v45 }
 0xfd4   : > { %v1653_v47 = vsub.f32 %v1646_v41, %v1652_v46  ;;  %v2550_v41 = vld [vmem:[#allocation13 + $0x8] sm:$0xff]  }
 0xfd6   : > { %v1654_v48 = vmul.f32 %v1653_v47, %v1653_v47 }
 0xfd8   : > { %v1655_v49 = vsel %vm708_vm6, %v1654_v48, 0.0 }
 0xfd9   : > { %1656 = vadd.xlane.f32.xlu1 %v1655_v49  ;;  %v2212_v49 = vld [vmem:[#allocation12 + $0x9] ss:$0 sm:$0xff] }
0x1062   : > { %v1657_v35 = vpop.xlane.xlu1 %1656 }
0x1063   : > { %v1658_v53 = vmul.f32 0.03125, %v1657_v35 }
0x1065   : > { %v1659_v54 = vadd.f32 1e-05, %v1658_v53 }
0x1067   : > { %2576 = vrsqrt.f32 %v1659_v54 }
0x1074   : > { %v2577_v55 = vpop.eup %2576 }
0x1075   : > { %v1661_v58 = vmul.f32 %v2577_v55, %v1653_v47  ;;  %v2211_v47 = vld [vmem:[#allocation12 + $0x8] ss:$0 sm:$0xff] }
0x1077   : > { %v1666_v60 = vmul.f32 %v2189_v56, %v1661_v58 }
0x1079   : > { %v1671_v61 = vadd.f32 %v2190_v59, %v1666_v60 }
0x107b   : > { %v1677_v62 = vpack.c.bf16 %v1671_v61, %v1671_v61 }
0x107d   : > { %2391 = vmatmul.mubr.msk.bf16.vlgmr.msra.gmra.mxu0 %vm708_vm6, %v1677_v62 }
0x107e   : > { %2410 = vmatprep.mubr.msk.bf16.mxu0 %vm2860_vm2, %v2859_v0  ;;  %2407 = vmatpush3.bf16.msra.mxu0 %v2550_v41 }
0x107f   : > { %2408 = vmatprep.subr.bf16.mxu0 %v2859_v0 }
0x1082   : > { %2409 = vmatpush3.bf16.msra.mxu0 %v2551_v42 }
0x113d   : > { %v1735_v3 = vpop.f32.mrf.mxu0 }
0x113e   : > { %v1736_v4 = vadd.f32 %v2191_v2, %v1735_v3 }
0x113f   : > { %v2392_v5 = vpop.f32.mrf.mxu0 }
0x1140   : > { %v1741_v6 = vmax.f32 %v1736_v4, 0.0 }
0x1141   : > { %v1738_v7 = vpop.f32.mrf.mxu0 }
0x1142   : > { %v1751_v8 = vpack.c.bf16 %v1741_v6, %v1741_v6 }
0x1143   : > { %v2393_v9 = vpop.f32.mrf.mxu0 }
0x1144   : > { %2403 = vmatmul.mubr.msk.bf16.vlgmr.msra.gmra.mxu1 %vm1196_vm8, %v1751_v8 }
0x1204   : > { %v1821_v11 = vpop.f32.mrf.mxu1 }
0x1205   : > { %v1822_v57 = vadd.f32 %v2203_v10, %v1821_v11 }
0x1206   : > { %v2404_v12 = vpop.f32.mrf.mxu1 }
0x1207   : > { %v1827_v13 = vadd.f32 %v1822_v57, %v1671_v61 }
0x1208   : > { %v1824_v14 = vpop.f32.mrf.mxu1 }
0x1209   : > { %v1830_v15 = vsel %vm708_vm6, %v1827_v13, 0.0 }
0x120a   : > { %1831 = vadd.xlane.f32.xlu0 %v1830_v15  ;;  %v2405_v16 = vpop.f32.mrf.mxu1 }
0x1293   : > { %v1832_v17 = vpop.xlane.xlu0 %1831 }
0x1294   : > { %v1833_v18 = vmul.f32 0.03125, %v1832_v17 }
0x1296   : > { %v1834_v19 = vsub.f32 %v1827_v13, %v1833_v18 }
0x1298   : > { %v1835_v20 = vmul.f32 %v1834_v19, %v1834_v19 }
0x129a   : > { %v1836_v21 = vsel %vm708_vm6, %v1835_v20, 0.0 }
0x129b   : > { %1837 = vadd.xlane.f32.xlu1 %v1836_v21 }
0x1324   : > { %v1838_v22 = vpop.xlane.xlu1 %1837 }
0x1325   : > { %v1839_v23 = vmul.f32 0.03125, %v1838_v22 }
0x1327   : > { %v1840_v26 = vadd.f32 1e-05, %v1839_v23 }
0x1329   : > { %2578 = vrsqrt.f32 %v1840_v26 }
0x1336   : > { %v2579_v27 = vpop.eup %2578 }
0x1337   : > { %v1842_v29 = vmul.f32 %v2579_v27, %v1834_v19 }
0x1339   : > { %v1847_v31 = vmul.f32 %v2209_v28, %v1842_v29 }
0x133b   : > { %v1852_v32 = vadd.f32 %v2210_v30, %v1847_v31 }
0x133d   : > { %v1855_v33 = vsel %vm708_vm6, %v1852_v32, 0.0 }
0x133e   : > { %1856 = vadd.xlane.f32.xlu0 %v1855_v33 }
0x13c7   : > { %v1857_v34 = vpop.xlane.xlu0 %1856 }
0x13c8   : > { %v1858_v36 = vmul.f32 0.03125, %v1857_v34 }
0x13ca   : > { %v1859_v37 = vsub.f32 %v1852_v32, %v1858_v36 }
0x13cc   : > { %v1860_v39 = vmul.f32 %v1859_v37, %v1859_v37 }
0x13ce   : > { %v1861_v40 = vsel %vm708_vm6, %v1860_v39, 0.0 }
0x13cf   : > { %1862 = vadd.xlane.f32.xlu1 %v1861_v40 }
0x1458   : > { %v1863_v43 = vpop.xlane.xlu1 %1862 }
0x1459   : > { %v1864_v44 = vmul.f32 0.03125, %v1863_v43 }
0x145b   : > { %v1865_v45 = vadd.f32 1e-05, %v1864_v44 }
0x145d   : > { %2580 = vrsqrt.f32 %v1865_v45 }
0x146a   : > { %v2581_v46 = vpop.eup %2580 }
0x146b   : > { %v1867_v48 = vmul.f32 %v2581_v46, %v1859_v37 }
0x146d   : > { %v1872_v50 = vmul.f32 %v2211_v47, %v1867_v48 }
0x146f   : > { %v1877_v51 = vadd.f32 %v2212_v49, %v1872_v50 }
0x1471   : > { %v1882_v38 = vpack.c.bf16 %v1877_v51, %v1877_v51 }
0x1473   : > { %2411 = vmatmul.mubr.msk.bf16.vlgmr.msra.gmra.mxu0 %vm708_vm6, %v1882_v38 }
0x1533   : > { %v1939_v35 = vpop.f32.mrf.mxu0 }
0x1534   : > { %v1940_v53 = vadd.f32 %v2213_v52, %v1939_v35 }
0x1535   : > { %v2412_v54 = vpop.f32.mrf.mxu0 }
0x1536   : > { %v1945_v0 = vmul.f32 %v1940_v53, %v3102_v24 }
0x1537   : > { %v1942_v55 = vpop.f32.mrf.mxu0 }
0x1538   : > { %v1946_v56 = vadd.f32 %v1945_v0, %v3105_v25 }
0x1539   : > { %v2413_v58 = vpop.f32.mrf.mxu0 }
0x153a   : > { %1947 = vst [vmem:[%s589_s18] sm:$0xff] %v1946_v56 }
0x153b PF: > { %s29_s29 = sadd.s32 1, %s2842_s29  }
0x153c   : > { %p26_p12 = scmp.ge.s32.totalorder %s29_s29, 4  }
0x153e   :  { %28 = sbr.rel (!%p26_p12) target bundleno = 7 (0x7), region = 157 }
0x1543   :  { %1967 = vsyncpa [#allocation3], 1 }
0x1544   :  { %1969 = vsyncpa [#allocation3 + $0x1], 1 }
0x1545   :  { %1970 = vsyncpa [#allocation5], 1 }
0x1546   :  { %1971 = vsyncpa [#allocation8], 1 }
0x1547   :  { %1972 = vsyncpa [#allocation11], 1 }
0x1548   :  { %1973 = vsyncpa [#allocation14], 1 }

</bundles_post_ra>
